<compile_context>
chip_gen: v7x
topology: tpu7x:2x2x1
jax: 0.10.0
libtpu: 0.0.40
codegen_flags: <defaults>
</compile_context>

<pallas_src>
import jax
import jax.numpy as jnp
from jax import lax
from jax.experimental import pallas as pl
from jax.experimental.pallas import tpu as pltpu

EPS = 1e-5  # torch.nn.LayerNorm default eps


def _round_up(x, m):
    return ((x + m - 1) // m) * m


# ---------------- Fused Pallas kernel ----------------

def _make_fused_kernel(folded: bool, num_rest: int, ln_dim: int):
    """Build the fused trunk kernel for a fixed (static) network topology.

    folded   : encoder affine folded into block0 (num_cols > 1, Linear shortcut).
    num_rest : number of identity-shortcut residual blocks after block0.
    ln_dim   : TRUE channel count used as the LayerNorm divisor (channels may be
               zero-padded to a multiple of 128; pad lanes stay exactly 0).
    """
    inv_n = 1.0 / float(ln_dim)

    def _layernorm(h, gamma, beta):
        # One-pass statistics: the two reductions are independent and overlap
        # with VPU work.  Divisor is the true channel count so zero pad lanes
        # (which are exactly 0) do not perturb mean/var.  Pad lanes are then
        # re-zeroed by gamma = beta = 0 on those lanes.
        s1 = jnp.sum(h, axis=-1, keepdims=True)
        s2 = jnp.sum(h * h, axis=-1, keepdims=True)
        mu = s1 * inv_n
        var = s2 * inv_n - mu * mu
        return (h - mu) * lax.rsqrt(var + EPS) * gamma + beta

    def _block_tail(h, g1, be1, w2, b2, g2, be2, shortcut):
        h = _layernorm(h, g1, be1)
        h = jnp.maximum(h, 0.0)                       # dropout (eval) == identity
        h = jnp.dot(h.astype(jnp.bfloat16), w2,
                    preferred_element_type=jnp.float32) + b2
        h = _layernorm(h, g2, be2)
        h = jnp.maximum(h, 0.0)
        return h + shortcut

    def kernel(*refs):
        it = iter(refs)
        feat_ref = next(it)
        if not folded:
            enc_w_ref, enc_b_ref = next(it), next(it)
        w1_ref, b1_ref, g1_ref, be1_ref = next(it), next(it), next(it), next(it)
        w2_ref, b2_ref, g2_ref, be2_ref = next(it), next(it), next(it), next(it)
        if folded:
            ws_ref, bs_ref = next(it), next(it)
        if num_rest > 0:
            rw1, rb1, rg1, rbe1 = next(it), next(it), next(it), next(it)
            rw2, rb2, rg2, rbe2 = next(it), next(it), next(it), next(it)
        dg_ref, dbe_ref, dw_ref, db_ref = next(it), next(it), next(it), next(it)
        o_ref = next(it)

        feat = feat_ref[...]                              # [TB, num_cols] f32

        # ---- block 0 ----
        if folded:
            # Encoder affine folded into lin1 / shortcut at trace time:
            # first matmuls are [TB, num_cols] x [num_cols, C_pad] in f32.
            sc0 = jnp.dot(feat, ws_ref[...],
                          preferred_element_type=jnp.float32) + bs_ref[...]
            h = jnp.dot(feat, w1_ref[...],
                        preferred_element_type=jnp.float32) + b1_ref[...]
        else:
            # num_cols == 1 -> identity shortcut; encoder is one broadcast FMA.
            x0 = feat * enc_w_ref[...] + enc_b_ref[...]   # [TB, C_pad] f32
            sc0 = x0
            h = jnp.dot(x0.astype(jnp.bfloat16), w1_ref[...],
                        preferred_element_type=jnp.float32) + b1_ref[...]
        x = _block_tail(h, g1_ref[...], be1_ref[...], w2_ref[...], b2_ref[...],
                        g2_ref[...], be2_ref[...], sc0)

        # ---- remaining identity-shortcut blocks (weights stay VMEM-resident) ----
        if num_rest > 0:
            def body(i, xc):
                hh = jnp.dot(xc.astype(jnp.bfloat16), rw1[i],
                             preferred_element_type=jnp.float32) + rb1[i]
                return _block_tail(hh, rg1[i], rbe1[i], rw2[i], rb2[i],
                                   rg2[i], rbe2[i], xc)
            x = lax.fori_loop(0, num_rest, body, x, unroll=True)

        # ---- decoder: LayerNorm -> ReLU -> Linear (lane-dense padded output) ----
        h = _layernorm(x, dg_ref[...], dbe_ref[...])
        h = jnp.maximum(h, 0.0)
        o_ref[...] = jnp.dot(h.astype(jnp.bfloat16), dw_ref[...],
                             preferred_element_type=jnp.float32) + db_ref[...]

    return kernel


# ---------------- Wrapper ----------------

def resnet_forward(feat, params):
    B, num_cols = feat.shape
    channels = params["enc_w"].shape[1]
    out_channels = params["dec"]["w"].shape[1]
    blk0, rest, dec = params["blk0"], params["rest"], params["dec"]
    has_shortcut = "ws" in blk0          # == (num_cols * channels != channels)
    num_rest = 0 if rest is None else rest["w1"].shape[0]

    C_PAD = _round_up(channels, 128)
    O_PAD = _round_up(out_channels, 128)
    f32 = jnp.float32

    def pad_last(a, n):
        return jnp.pad(a, [(0, 0)] * (a.ndim - 1) + [(0, n - a.shape[-1])])

    def pad_last2(a, r, c):
        return jnp.pad(a, [(0, 0)] * (a.ndim - 2)
                       + [(0, r - a.shape[-2]), (0, c - a.shape[-1])])

    # ---- fold / pad parameters at trace time (tiny, one-off XLA ops) ----
    if has_shortcut:
        # Fold the per-column linear encoder into block0's lin1 and shortcut:
        #   W1'[c,n] = sum_k enc_w[c,k] * W1[c*C+k, n]
        #   b1'      = b1 + sum_{c,k} enc_b[c,k] * W1[c*C+k, n]
        w1r = blk0["w1"].astype(f32).reshape(num_cols, channels, channels)
        wsr = blk0["ws"].astype(f32).reshape(num_cols, channels, channels)
        w1f = jnp.einsum("ck,ckn->cn", params["enc_w"], w1r)
        b1f = blk0["b1"] + jnp.einsum("ck,ckn->n", params["enc_b"], w1r)[None, :]
        wsf = jnp.einsum("ck,ckn->cn", params["enc_w"], wsr)
        bsf = blk0["bs"] + jnp.einsum("ck,ckn->n", params["enc_b"], wsr)[None, :]
        args = [pad_last(w1f, C_PAD), pad_last(b1f, C_PAD)]
    else:
        # num_cols == 1: keep the broadcast encoder in-kernel; identity shortcut.
        args = [pad_last(params["enc_w"], C_PAD), pad_last(params["enc_b"], C_PAD),
                pad_last2(blk0["w1"], C_PAD, C_PAD), pad_last(blk0["b1"], C_PAD)]

    args += [pad_last(blk0["g1"], C_PAD), pad_last(blk0["be1"], C_PAD),
             pad_last2(blk0["w2"], C_PAD, C_PAD), pad_last(blk0["b2"], C_PAD),
             pad_last(blk0["g2"], C_PAD), pad_last(blk0["be2"], C_PAD)]
    if has_shortcut:
        args += [pad_last(wsf, C_PAD), pad_last(bsf, C_PAD)]
    if num_rest > 0:
        args += [pad_last2(rest["w1"], C_PAD, C_PAD), pad_last(rest["b1"], C_PAD),
                 pad_last(rest["g1"], C_PAD), pad_last(rest["be1"], C_PAD),
                 pad_last2(rest["w2"], C_PAD, C_PAD), pad_last(rest["b2"], C_PAD),
                 pad_last(rest["g2"], C_PAD), pad_last(rest["be2"], C_PAD)]
    args += [pad_last(dec["g"], C_PAD), pad_last(dec["be"], C_PAD),
             pad_last2(dec["w"], C_PAD, O_PAD), pad_last(dec["b"], O_PAD)]

    # ---- batch tiling: multiples of 16 rows (bf16 sublane packing), large tiles
    # to amortize per-step overhead, and grid >= 2 when the batch allows it so
    # both v7x TensorCores get work. ----
    B16 = _round_up(B, 16)
    if B16 >= 2048:
        TILE_B = 1024
    elif B16 >= 32:
        TILE_B = _round_up((B16 + 1) // 2, 16)
    else:
        TILE_B = B16
    B_pad = _round_up(B, TILE_B)
    feat_p = jnp.pad(feat, ((0, B_pad - B), (0, 0))) if B_pad != B else feat
    grid = (B_pad // TILE_B,)

    args = [feat_p] + args

    # ---- BlockSpecs: batch-tiled input/output, constant-index resident params ----
    def const_spec(a):
        if a.ndim == 3:
            return pl.BlockSpec(a.shape, lambda i: (0, 0, 0))
        return pl.BlockSpec(a.shape, lambda i: (0, 0))

    in_specs = [pl.BlockSpec((TILE_B, num_cols), lambda i: (i, 0))]
    in_specs += [const_spec(a) for a in args[1:]]
    out_specs = pl.BlockSpec((TILE_B, O_PAD), lambda i: (i, 0))

    # ---- VMEM budget: resident params (double-buffered by the pipeline) +
    # live activation tiles + double-buffered I/O tiles, capped by real chip VMEM.
    param_bytes = sum(int(a.size) * a.dtype.itemsize for a in args[1:])
    act_bytes = 6 * TILE_B * max(C_PAD, O_PAD) * 4
    io_bytes = 2 * 2 * TILE_B * (num_cols + O_PAD) * 4
    needed = 2 * param_bytes + act_bytes + io_bytes + (4 << 20)
    try:
        info = pltpu.get_tpu_info()
        cap = int(getattr(info, "vmem_capacity_bytes", 64 << 20)) - (8 << 20)
    except Exception:
        cap = 56 << 20          # safe on v7x's 64 MiB / TensorCore
    vmem_limit = int(min(max(needed, 16 << 20), max(cap, 16 << 20)))

    kernel = _make_fused_kernel(has_shortcut, num_rest, channels)

    out = pl.pallas_call(
        kernel,
        out_shape=jax.ShapeDtypeStruct((B_pad, O_PAD), jnp.float32),
        grid=grid,
        in_specs=in_specs,
        out_specs=out_specs,
        compiler_params=pltpu.CompilerParams(
            dimension_semantics=("parallel",),
            vmem_limit_bytes=vmem_limit),
    )(*args)
    return out[:B, :out_channels]


# ---------------- Pure-JAX reference (f32, no padding/fusion) ----------------

def resnet_reference(feat, params):
    x = (feat[:, :, None] * params["enc_w"][None] + params["enc_b"][None])
    x = x.reshape(feat.shape[0], -1)

    blocks = [params["blk0"]]
    rest = params["rest"]
    if rest is not None:
        for i in range(rest["w1"].shape[0]):
            blocks.append({k: rest[k][i] for k in rest})

    def ln(h, g, b):
        mu = jnp.mean(h, -1, keepdims=True)
        var = jnp.mean((h - mu) ** 2, -1, keepdims=True)
        return (h - mu) / jnp.sqrt(var + EPS) * g + b

    for blk in blocks:
        h = x @ blk["w1"].astype(jnp.float32) + blk["b1"]
        h = jnp.maximum(ln(h, blk["g1"], blk["be1"]), 0.0)
        h = h @ blk["w2"].astype(jnp.float32) + blk["b2"]
        h = jnp.maximum(ln(h, blk["g2"], blk["be2"]), 0.0)
        sc = x @ blk["ws"].astype(jnp.float32) + blk["bs"] if "ws" in blk else x
        x = h + sc

    d = params["dec"]
    h = jnp.maximum(ln(x, d["g"], d["be"]), 0.0)
    return h @ d["w"].astype(jnp.float32) + d["b"]


# ---------------- Deterministic parameter init ----------------

def _linear_init(key, fan_in, fan_out):
    """PyTorch nn.Linear default init; weights stored [in, out] in bf16."""
    k1, k2 = jax.random.split(key)
    bound = 1.0 / (fan_in ** 0.5)
    w = jax.random.uniform(k1, (fan_in, fan_out), jnp.float32, -bound, bound)
    b = jax.random.uniform(k2, (1, fan_out), jnp.float32, -bound, bound)
    return w.astype(jnp.bfloat16), b


def make_params(key, num_cols, channels, out_channels, num_layers):
    keys = jax.random.split(key, 2 + 4 * num_layers)
    ki = iter(keys)

    params = {}
    # per-column linear encoder: weight/bias of shape [num_cols, channels] (f32)
    params["enc_w"] = jax.random.uniform(next(ki), (num_cols, channels),
                                         jnp.float32, -1.0, 1.0)
    params["enc_b"] = jax.random.uniform(next(ki), (num_cols, channels),
                                         jnp.float32, -1.0, 1.0)

    blocks = []
    for i in range(num_layers):
        in_ch = num_cols * channels if i == 0 else channels
        w1, b1 = _linear_init(next(ki), in_ch, channels)
        w2, b2 = _linear_init(next(ki), channels, channels)
        blk = {
            "w1": w1, "b1": b1,
            "g1": jnp.ones((1, channels), jnp.float32),
            "be1": jnp.zeros((1, channels), jnp.float32),
            "w2": w2, "b2": b2,
            "g2": jnp.ones((1, channels), jnp.float32),
            "be2": jnp.zeros((1, channels), jnp.float32),
        }
        if in_ch != channels:
            ws, bs = _linear_init(next(ki), in_ch, channels)
            blk["ws"] = ws
            blk["bs"] = bs
        else:
            next(ki)  # keep key consumption deterministic regardless of shortcut
        blocks.append(blk)

    params["blk0"] = blocks[0]
    rest = blocks[1:]
    if rest:
        params["rest"] = {k: jnp.stack([b[k] for b in rest])
                          for k in ("w1", "b1", "g1", "be1",
                                    "w2", "b2", "g2", "be2")}
    else:
        params["rest"] = None

    dw, db = _linear_init(next(ki), channels, out_channels)
    params["dec"] = {
        "g": jnp.ones((1, channels), jnp.float32),
        "be": jnp.zeros((1, channels), jnp.float32),
        "w": dw, "b": db,
    }
    return params


if __name__ == "__main__":
    batch = 8
    num_cols = 4
    channels = 32
    out_channels = 8
    num_layers = 3

    key = jax.random.PRNGKey(0)
    k_feat, k_params = jax.random.split(key)
    feat = jax.random.normal(k_feat, (batch, num_cols), jnp.float32)
    params = make_params(k_params, num_cols, channels, out_channels, num_layers)

    fwd = jax.jit(resnet_forward)
    out = fwd(feat, params)
    jax.block_until_ready(out)

    assert out.shape == (batch, out_channels), out.shape
    assert bool(jnp.all(jnp.isfinite(out)))

    # bf16-matmul kernel vs f32 reference: loose, structural-level tolerance.
    ref = resnet_reference(feat, params)
    err = float(jnp.max(jnp.abs(out - ref)))
    assert err < 0.2, f"max |out - ref| = {err}"
    print("KERNEL_OK")
</pallas_src>

<mosaic_0001>
module attributes {stable_mosaic.version = 11 : i64} {
  func.func @kernel(%arg0: i32, %arg1: memref<16x4xf32, #tpu.memory_space<vmem>>, %arg2: memref<4x128xf32, #tpu.memory_space<vmem>>, %arg3: memref<1x128xf32, #tpu.memory_space<vmem>>, %arg4: memref<1x128xf32, #tpu.memory_space<vmem>>, %arg5: memref<1x128xf32, #tpu.memory_space<vmem>>, %arg6: memref<128x128xbf16, #tpu.memory_space<vmem>>, %arg7: memref<1x128xf32, #tpu.memory_space<vmem>>, %arg8: memref<1x128xf32, #tpu.memory_space<vmem>>, %arg9: memref<1x128xf32, #tpu.memory_space<vmem>>, %arg10: memref<4x128xf32, #tpu.memory_space<vmem>>, %arg11: memref<1x128xf32, #tpu.memory_space<vmem>>, %arg12: memref<2x128x128xbf16, #tpu.memory_space<vmem>>, %arg13: memref<2x1x128xf32, #tpu.memory_space<vmem>>, %arg14: memref<2x1x128xf32, #tpu.memory_space<vmem>>, %arg15: memref<2x1x128xf32, #tpu.memory_space<vmem>>, %arg16: memref<2x128x128xbf16, #tpu.memory_space<vmem>>, %arg17: memref<2x1x128xf32, #tpu.memory_space<vmem>>, %arg18: memref<2x1x128xf32, #tpu.memory_space<vmem>>, %arg19: memref<2x1x128xf32, #tpu.memory_space<vmem>>, %arg20: memref<1x128xf32, #tpu.memory_space<vmem>>, %arg21: memref<1x128xf32, #tpu.memory_space<vmem>>, %arg22: memref<128x128xbf16, #tpu.memory_space<vmem>>, %arg23: memref<1x128xf32, #tpu.memory_space<vmem>>, %arg24: memref<16x128xf32, #tpu.memory_space<vmem>>) attributes {dimension_semantics = [#tpu.dimension_semantics<parallel>], iteration_bounds = array<i64: 1>, scalar_prefetch = 0 : i64, scratch_operands = 0 : i64, tpu.core_type = #tpu.core_type<tc>, window_params = [{transform_indices = @transform_0, window_bounds = array<i64: 16, 4>}, {pipeline_mode = #tpu.pipeline_mode<synchronous>, transform_indices = @transform_1, window_bounds = array<i64: 4, 128>}, {pipeline_mode = #tpu.pipeline_mode<synchronous>, transform_indices = @transform_2, window_bounds = array<i64: 1, 128>}, {pipeline_mode = #tpu.pipeline_mode<synchronous>, transform_indices = @transform_3, window_bounds = array<i64: 1, 128>}, {pipeline_mode = #tpu.pipeline_mode<synchronous>, transform_indices = @transform_4, window_bounds = array<i64: 1, 128>}, {pipeline_mode = #tpu.pipeline_mode<synchronous>, transform_indices = @transform_5, window_bounds = array<i64: 128, 128>}, {pipeline_mode = #tpu.pipeline_mode<synchronous>, transform_indices = @transform_6, window_bounds = array<i64: 1, 128>}, {pipeline_mode = #tpu.pipeline_mode<synchronous>, transform_indices = @transform_7, window_bounds = array<i64: 1, 128>}, {pipeline_mode = #tpu.pipeline_mode<synchronous>, transform_indices = @transform_8, window_bounds = array<i64: 1, 128>}, {pipeline_mode = #tpu.pipeline_mode<synchronous>, transform_indices = @transform_9, window_bounds = array<i64: 4, 128>}, {pipeline_mode = #tpu.pipeline_mode<synchronous>, transform_indices = @transform_10, window_bounds = array<i64: 1, 128>}, {pipeline_mode = #tpu.pipeline_mode<synchronous>, transform_indices = @transform_11, window_bounds = array<i64: 2, 128, 128>}, {pipeline_mode = #tpu.pipeline_mode<synchronous>, transform_indices = @transform_12, window_bounds = array<i64: 2, 1, 128>}, {pipeline_mode = #tpu.pipeline_mode<synchronous>, transform_indices = @transform_13, window_bounds = array<i64: 2, 1, 128>}, {pipeline_mode = #tpu.pipeline_mode<synchronous>, transform_indices = @transform_14, window_bounds = array<i64: 2, 1, 128>}, {pipeline_mode = #tpu.pipeline_mode<synchronous>, transform_indices = @transform_15, window_bounds = array<i64: 2, 128, 128>}, {pipeline_mode = #tpu.pipeline_mode<synchronous>, transform_indices = @transform_16, window_bounds = array<i64: 2, 1, 128>}, {pipeline_mode = #tpu.pipeline_mode<synchronous>, transform_indices = @transform_17, window_bounds = array<i64: 2, 1, 128>}, {pipeline_mode = #tpu.pipeline_mode<synchronous>, transform_indices = @transform_18, window_bounds = array<i64: 2, 1, 128>}, {pipeline_mode = #tpu.pipeline_mode<synchronous>, transform_indices = @transform_19, window_bounds = array<i64: 1, 128>}, {pipeline_mode = #tpu.pipeline_mode<synchronous>, transform_indices = @transform_20, window_bounds = array<i64: 1, 128>}, {pipeline_mode = #tpu.pipeline_mode<synchronous>, transform_indices = @transform_21, window_bounds = array<i64: 128, 128>}, {pipeline_mode = #tpu.pipeline_mode<synchronous>, transform_indices = @transform_22, window_bounds = array<i64: 1, 128>}, {transform_indices = @transform_23, window_bounds = array<i64: 16, 128>}]} {
    %c0 = arith.constant 0 : index
    %c0_0 = arith.constant 0 : index
    %0 = vector.load %arg1[%c0, %c0_0] : memref<16x4xf32, #tpu.memory_space<vmem>>, vector<16x4xf32>
    %c0_1 = arith.constant 0 : index
    %c0_2 = arith.constant 0 : index
    %1 = vector.load %arg10[%c0_1, %c0_2] : memref<4x128xf32, #tpu.memory_space<vmem>>, vector<4x128xf32>
    %cst = arith.constant dense<0.000000e+00> : vector<16x128xf32>
    %2 = tpu.matmul %0, %1, %cst {dimension_numbers = #tpu.dot_dimension_numbers<[1], [0], [0], [1], [0, 0, 1, 1], [], []>} : vector<16x4xf32>, vector<4x128xf32>, vector<16x128xf32> -> vector<16x128xf32>
    %c0_3 = arith.constant 0 : index
    %c0_4 = arith.constant 0 : index
    %3 = vector.load %arg11[%c0_3, %c0_4] : memref<1x128xf32, #tpu.memory_space<vmem>>, vector<1x128xf32>
    %4 = vector.broadcast %3 : vector<1x128xf32> to vector<16x128xf32>
    %5 = arith.addf %2, %4 : vector<16x128xf32>
    %c0_5 = arith.constant 0 : index
    %c0_6 = arith.constant 0 : index
    %6 = vector.load %arg2[%c0_5, %c0_6] : memref<4x128xf32, #tpu.memory_space<vmem>>, vector<4x128xf32>
    %cst_7 = arith.constant dense<0.000000e+00> : vector<16x128xf32>
    %7 = tpu.matmul %0, %6, %cst_7 {dimension_numbers = #tpu.dot_dimension_numbers<[1], [0], [0], [1], [0, 0, 1, 1], [], []>} : vector<16x4xf32>, vector<4x128xf32>, vector<16x128xf32> -> vector<16x128xf32>
    %c0_8 = arith.constant 0 : index
    %c0_9 = arith.constant 0 : index
    %8 = vector.load %arg3[%c0_8, %c0_9] : memref<1x128xf32, #tpu.memory_space<vmem>>, vector<1x128xf32>
    %9 = vector.broadcast %8 : vector<1x128xf32> to vector<16x128xf32>
    %10 = arith.addf %7, %9 : vector<16x128xf32>
    %c0_10 = arith.constant 0 : index
    %c0_11 = arith.constant 0 : index
    %11 = vector.load %arg4[%c0_10, %c0_11] : memref<1x128xf32, #tpu.memory_space<vmem>>, vector<1x128xf32>
    %c0_12 = arith.constant 0 : index
    %c0_13 = arith.constant 0 : index
    %12 = vector.load %arg5[%c0_12, %c0_13] : memref<1x128xf32, #tpu.memory_space<vmem>>, vector<1x128xf32>
    %c0_14 = arith.constant 0 : index
    %c0_15 = arith.constant 0 : index
    %13 = vector.load %arg6[%c0_14, %c0_15] : memref<128x128xbf16, #tpu.memory_space<vmem>>, vector<128x128xbf16>
    %c0_16 = arith.constant 0 : index
    %c0_17 = arith.constant 0 : index
    %14 = vector.load %arg7[%c0_16, %c0_17] : memref<1x128xf32, #tpu.memory_space<vmem>>, vector<1x128xf32>
    %c0_18 = arith.constant 0 : index
    %c0_19 = arith.constant 0 : index
    %15 = vector.load %arg8[%c0_18, %c0_19] : memref<1x128xf32, #tpu.memory_space<vmem>>, vector<1x128xf32>
    %c0_20 = arith.constant 0 : index
    %c0_21 = arith.constant 0 : index
    %16 = vector.load %arg9[%c0_20, %c0_21] : memref<1x128xf32, #tpu.memory_space<vmem>>, vector<1x128xf32>
    %cst_22 = arith.constant dense<0.000000e+00> : vector<16xf32>
    %17 = vector.multi_reduction <add>, %10, %cst_22 [1] : vector<16x128xf32> to vector<16xf32>
    %18 = vector.shape_cast %17 : vector<16xf32> to vector<16x1xf32>
    %19 = arith.mulf %10, %10 : vector<16x128xf32>
    %cst_23 = arith.constant dense<0.000000e+00> : vector<16xf32>
    %20 = vector.multi_reduction <add>, %19, %cst_23 [1] : vector<16x128xf32> to vector<16xf32>
    %21 = vector.shape_cast %20 : vector<16xf32> to vector<16x1xf32>
    %cst_24 = arith.constant 3.125000e-02 : f32
    %22 = vector.broadcast %cst_24 : f32 to vector<16x1xf32>
    %23 = arith.mulf %18, %22 : vector<16x1xf32>
    %cst_25 = arith.constant 3.125000e-02 : f32
    %24 = vector.broadcast %cst_25 : f32 to vector<16x1xf32>
    %25 = arith.mulf %21, %24 : vector<16x1xf32>
    %26 = arith.mulf %23, %23 : vector<16x1xf32>
    %27 = arith.subf %25, %26 : vector<16x1xf32>
    %28 = vector.broadcast %23 : vector<16x1xf32> to vector<16x128xf32>
    %29 = arith.subf %10, %28 : vector<16x128xf32>
    %cst_26 = arith.constant 9.99999974E-6 : f32
    %30 = vector.broadcast %cst_26 : f32 to vector<16x1xf32>
    %31 = arith.addf %27, %30 : vector<16x1xf32>
    %32 = math.rsqrt %31 : vector<16x1xf32>
    %33 = vector.broadcast %32 : vector<16x1xf32> to vector<16x128xf32>
    %34 = arith.mulf %29, %33 : vector<16x128xf32>
    %35 = vector.broadcast %11 : vector<1x128xf32> to vector<16x128xf32>
    %36 = arith.mulf %34, %35 : vector<16x128xf32>
    %37 = vector.broadcast %12 : vector<1x128xf32> to vector<16x128xf32>
    %38 = arith.addf %36, %37 : vector<16x128xf32>
    %cst_27 = arith.constant 0.000000e+00 : f32
    %39 = vector.broadcast %cst_27 : f32 to vector<16x128xf32>
    %40 = arith.maximumf %38, %39 : vector<16x128xf32>
    %41 = arith.truncf %40 : vector<16x128xf32> to vector<16x128xbf16>
    %cst_28 = arith.constant dense<0.000000e+00> : vector<16x128xf32>
    %42 = tpu.matmul %41, %13, %cst_28 {dimension_numbers = #tpu.dot_dimension_numbers<[1], [0], [0], [1], [0, 0, 1, 1], [], []>} : vector<16x128xbf16>, vector<128x128xbf16>, vector<16x128xf32> -> vector<16x128xf32>
    %43 = vector.broadcast %14 : vector<1x128xf32> to vector<16x128xf32>
    %44 = arith.addf %42, %43 : vector<16x128xf32>
    %cst_29 = arith.constant dense<0.000000e+00> : vector<16xf32>
    %45 = vector.multi_reduction <add>, %44, %cst_29 [1] : vector<16x128xf32> to vector<16xf32>
    %46 = vector.shape_cast %45 : vector<16xf32> to vector<16x1xf32>
    %47 = arith.mulf %44, %44 : vector<16x128xf32>
    %cst_30 = arith.constant dense<0.000000e+00> : vector<16xf32>
    %48 = vector.multi_reduction <add>, %47, %cst_30 [1] : vector<16x128xf32> to vector<16xf32>
    %49 = vector.shape_cast %48 : vector<16xf32> to vector<16x1xf32>
    %cst_31 = arith.constant 3.125000e-02 : f32
    %50 = vector.broadcast %cst_31 : f32 to vector<16x1xf32>
    %51 = arith.mulf %46, %50 : vector<16x1xf32>
    %cst_32 = arith.constant 3.125000e-02 : f32
    %52 = vector.broadcast %cst_32 : f32 to vector<16x1xf32>
    %53 = arith.mulf %49, %52 : vector<16x1xf32>
    %54 = arith.mulf %51, %51 : vector<16x1xf32>
    %55 = arith.subf %53, %54 : vector<16x1xf32>
    %56 = vector.broadcast %51 : vector<16x1xf32> to vector<16x128xf32>
    %57 = arith.subf %44, %56 : vector<16x128xf32>
    %cst_33 = arith.constant 9.99999974E-6 : f32
    %58 = vector.broadcast %cst_33 : f32 to vector<16x1xf32>
    %59 = arith.addf %55, %58 : vector<16x1xf32>
    %60 = math.rsqrt %59 : vector<16x1xf32>
    %61 = vector.broadcast %60 : vector<16x1xf32> to vector<16x128xf32>
    %62 = arith.mulf %57, %61 : vector<16x128xf32>
    %63 = vector.broadcast %15 : vector<1x128xf32> to vector<16x128xf32>
    %64 = arith.mulf %62, %63 : vector<16x128xf32>
    %65 = vector.broadcast %16 : vector<1x128xf32> to vector<16x128xf32>
    %66 = arith.addf %64, %65 : vector<16x128xf32>
    %cst_34 = arith.constant 0.000000e+00 : f32
    %67 = vector.broadcast %cst_34 : f32 to vector<16x128xf32>
    %68 = arith.maximumf %66, %67 : vector<16x128xf32>
    %69 = arith.addf %68, %5 : vector<16x128xf32>
    %c0_i32 = arith.constant 0 : i32
    %70 = arith.truncf %69 : vector<16x128xf32> to vector<16x128xbf16>
    %71 = arith.index_cast %c0_i32 : i32 to index
    %c0_35 = arith.constant 0 : index
    %c0_36 = arith.constant 0 : index
    %72 = vector.load %arg12[%71, %c0_35, %c0_36] : memref<2x128x128xbf16, #tpu.memory_space<vmem>>, vector<1x128x128xbf16>
    %73 = vector.shape_cast %72 : vector<1x128x128xbf16> to vector<128x128xbf16>
    %cst_37 = arith.constant dense<0.000000e+00> : vector<16x128xf32>
    %74 = tpu.matmul %70, %73, %cst_37 {dimension_numbers = #tpu.dot_dimension_numbers<[1], [0], [0], [1], [0, 0, 1, 1], [], []>} : vector<16x128xbf16>, vector<128x128xbf16>, vector<16x128xf32> -> vector<16x128xf32>
    %75 = arith.index_cast %c0_i32 : i32 to index
    %c0_38 = arith.constant 0 : index
    %c0_39 = arith.constant 0 : index
    %76 = vector.load %arg13[%75, %c0_38, %c0_39] : memref<2x1x128xf32, #tpu.memory_space<vmem>>, vector<1x1x128xf32>
    %77 = vector.shape_cast %76 : vector<1x1x128xf32> to vector<1x128xf32>
    %78 = vector.broadcast %77 : vector<1x128xf32> to vector<16x128xf32>
    %79 = arith.addf %74, %78 : vector<16x128xf32>
    %80 = arith.index_cast %c0_i32 : i32 to index
    %c0_40 = arith.constant 0 : index
    %c0_41 = arith.constant 0 : index
    %81 = vector.load %arg14[%80, %c0_40, %c0_41] : memref<2x1x128xf32, #tpu.memory_space<vmem>>, vector<1x1x128xf32>
    %82 = vector.shape_cast %81 : vector<1x1x128xf32> to vector<1x128xf32>
    %83 = arith.index_cast %c0_i32 : i32 to index
    %c0_42 = arith.constant 0 : index
    %c0_43 = arith.constant 0 : index
    %84 = vector.load %arg15[%83, %c0_42, %c0_43] : memref<2x1x128xf32, #tpu.memory_space<vmem>>, vector<1x1x128xf32>
    %85 = vector.shape_cast %84 : vector<1x1x128xf32> to vector<1x128xf32>
    %86 = arith.index_cast %c0_i32 : i32 to index
    %c0_44 = arith.constant 0 : index
    %c0_45 = arith.constant 0 : index
    %87 = vector.load %arg16[%86, %c0_44, %c0_45] : memref<2x128x128xbf16, #tpu.memory_space<vmem>>, vector<1x128x128xbf16>
    %88 = vector.shape_cast %87 : vector<1x128x128xbf16> to vector<128x128xbf16>
    %89 = arith.index_cast %c0_i32 : i32 to index
    %c0_46 = arith.constant 0 : index
    %c0_47 = arith.constant 0 : index
    %90 = vector.load %arg17[%89, %c0_46, %c0_47] : memref<2x1x128xf32, #tpu.memory_space<vmem>>, vector<1x1x128xf32>
    %91 = vector.shape_cast %90 : vector<1x1x128xf32> to vector<1x128xf32>
    %92 = arith.index_cast %c0_i32 : i32 to index
    %c0_48 = arith.constant 0 : index
    %c0_49 = arith.constant 0 : index
    %93 = vector.load %arg18[%92, %c0_48, %c0_49] : memref<2x1x128xf32, #tpu.memory_space<vmem>>, vector<1x1x128xf32>
    %94 = vector.shape_cast %93 : vector<1x1x128xf32> to vector<1x128xf32>
    %95 = arith.index_cast %c0_i32 : i32 to index
    %c0_50 = arith.constant 0 : index
    %c0_51 = arith.constant 0 : index
    %96 = vector.load %arg19[%95, %c0_50, %c0_51] : memref<2x1x128xf32, #tpu.memory_space<vmem>>, vector<1x1x128xf32>
    %97 = vector.shape_cast %96 : vector<1x1x128xf32> to vector<1x128xf32>
    %cst_52 = arith.constant dense<0.000000e+00> : vector<16xf32>
    %98 = vector.multi_reduction <add>, %79, %cst_52 [1] : vector<16x128xf32> to vector<16xf32>
    %99 = vector.shape_cast %98 : vector<16xf32> to vector<16x1xf32>
    %100 = arith.mulf %79, %79 : vector<16x128xf32>
    %cst_53 = arith.constant dense<0.000000e+00> : vector<16xf32>
    %101 = vector.multi_reduction <add>, %100, %cst_53 [1] : vector<16x128xf32> to vector<16xf32>
    %102 = vector.shape_cast %101 : vector<16xf32> to vector<16x1xf32>
    %cst_54 = arith.constant 3.125000e-02 : f32
    %103 = vector.broadcast %cst_54 : f32 to vector<16x1xf32>
    %104 = arith.mulf %99, %103 : vector<16x1xf32>
    %cst_55 = arith.constant 3.125000e-02 : f32
    %105 = vector.broadcast %cst_55 : f32 to vector<16x1xf32>
    %106 = arith.mulf %102, %105 : vector<16x1xf32>
    %107 = arith.mulf %104, %104 : vector<16x1xf32>
    %108 = arith.subf %106, %107 : vector<16x1xf32>
    %109 = vector.broadcast %104 : vector<16x1xf32> to vector<16x128xf32>
    %110 = arith.subf %79, %109 : vector<16x128xf32>
    %cst_56 = arith.constant 9.99999974E-6 : f32
    %111 = vector.broadcast %cst_56 : f32 to vector<16x1xf32>
    %112 = arith.addf %108, %111 : vector<16x1xf32>
    %113 = math.rsqrt %112 : vector<16x1xf32>
    %114 = vector.broadcast %113 : vector<16x1xf32> to vector<16x128xf32>
    %115 = arith.mulf %110, %114 : vector<16x128xf32>
    %116 = vector.broadcast %82 : vector<1x128xf32> to vector<16x128xf32>
    %117 = arith.mulf %115, %116 : vector<16x128xf32>
    %118 = vector.broadcast %85 : vector<1x128xf32> to vector<16x128xf32>
    %119 = arith.addf %117, %118 : vector<16x128xf32>
    %cst_57 = arith.constant 0.000000e+00 : f32
    %120 = vector.broadcast %cst_57 : f32 to vector<16x128xf32>
    %121 = arith.maximumf %119, %120 : vector<16x128xf32>
    %122 = arith.truncf %121 : vector<16x128xf32> to vector<16x128xbf16>
    %cst_58 = arith.constant dense<0.000000e+00> : vector<16x128xf32>
    %123 = tpu.matmul %122, %88, %cst_58 {dimension_numbers = #tpu.dot_dimension_numbers<[1], [0], [0], [1], [0, 0, 1, 1], [], []>} : vector<16x128xbf16>, vector<128x128xbf16>, vector<16x128xf32> -> vector<16x128xf32>
    %124 = vector.broadcast %91 : vector<1x128xf32> to vector<16x128xf32>
    %125 = arith.addf %123, %124 : vector<16x128xf32>
    %cst_59 = arith.constant dense<0.000000e+00> : vector<16xf32>
    %126 = vector.multi_reduction <add>, %125, %cst_59 [1] : vector<16x128xf32> to vector<16xf32>
    %127 = vector.shape_cast %126 : vector<16xf32> to vector<16x1xf32>
    %128 = arith.mulf %125, %125 : vector<16x128xf32>
    %cst_60 = arith.constant dense<0.000000e+00> : vector<16xf32>
    %129 = vector.multi_reduction <add>, %128, %cst_60 [1] : vector<16x128xf32> to vector<16xf32>
    %130 = vector.shape_cast %129 : vector<16xf32> to vector<16x1xf32>
    %cst_61 = arith.constant 3.125000e-02 : f32
    %131 = vector.broadcast %cst_61 : f32 to vector<16x1xf32>
    %132 = arith.mulf %127, %131 : vector<16x1xf32>
    %cst_62 = arith.constant 3.125000e-02 : f32
    %133 = vector.broadcast %cst_62 : f32 to vector<16x1xf32>
    %134 = arith.mulf %130, %133 : vector<16x1xf32>
    %135 = arith.mulf %132, %132 : vector<16x1xf32>
    %136 = arith.subf %134, %135 : vector<16x1xf32>
    %137 = vector.broadcast %132 : vector<16x1xf32> to vector<16x128xf32>
    %138 = arith.subf %125, %137 : vector<16x128xf32>
    %cst_63 = arith.constant 9.99999974E-6 : f32
    %139 = vector.broadcast %cst_63 : f32 to vector<16x1xf32>
    %140 = arith.addf %136, %139 : vector<16x1xf32>
    %141 = math.rsqrt %140 : vector<16x1xf32>
    %142 = vector.broadcast %141 : vector<16x1xf32> to vector<16x128xf32>
    %143 = arith.mulf %138, %142 : vector<16x128xf32>
    %144 = vector.broadcast %94 : vector<1x128xf32> to vector<16x128xf32>
    %145 = arith.mulf %143, %144 : vector<16x128xf32>
    %146 = vector.broadcast %97 : vector<1x128xf32> to vector<16x128xf32>
    %147 = arith.addf %145, %146 : vector<16x128xf32>
    %cst_64 = arith.constant 0.000000e+00 : f32
    %148 = vector.broadcast %cst_64 : f32 to vector<16x128xf32>
    %149 = arith.maximumf %147, %148 : vector<16x128xf32>
    %150 = arith.addf %149, %69 : vector<16x128xf32>
    %c1_i32 = arith.constant 1 : i32
    %151 = arith.truncf %150 : vector<16x128xf32> to vector<16x128xbf16>
    %152 = arith.index_cast %c1_i32 : i32 to index
    %c0_65 = arith.constant 0 : index
    %c0_66 = arith.constant 0 : index
    %153 = vector.load %arg12[%152, %c0_65, %c0_66] : memref<2x128x128xbf16, #tpu.memory_space<vmem>>, vector<1x128x128xbf16>
    %154 = vector.shape_cast %153 : vector<1x128x128xbf16> to vector<128x128xbf16>
    %cst_67 = arith.constant dense<0.000000e+00> : vector<16x128xf32>
    %155 = tpu.matmul %151, %154, %cst_67 {dimension_numbers = #tpu.dot_dimension_numbers<[1], [0], [0], [1], [0, 0, 1, 1], [], []>} : vector<16x128xbf16>, vector<128x128xbf16>, vector<16x128xf32> -> vector<16x128xf32>
    %156 = arith.index_cast %c1_i32 : i32 to index
    %c0_68 = arith.constant 0 : index
    %c0_69 = arith.constant 0 : index
    %157 = vector.load %arg13[%156, %c0_68, %c0_69] : memref<2x1x128xf32, #tpu.memory_space<vmem>>, vector<1x1x128xf32>
    %158 = vector.shape_cast %157 : vector<1x1x128xf32> to vector<1x128xf32>
    %159 = vector.broadcast %158 : vector<1x128xf32> to vector<16x128xf32>
    %160 = arith.addf %155, %159 : vector<16x128xf32>
    %161 = arith.index_cast %c1_i32 : i32 to index
    %c0_70 = arith.constant 0 : index
    %c0_71 = arith.constant 0 : index
    %162 = vector.load %arg14[%161, %c0_70, %c0_71] : memref<2x1x128xf32, #tpu.memory_space<vmem>>, vector<1x1x128xf32>
    %163 = vector.shape_cast %162 : vector<1x1x128xf32> to vector<1x128xf32>
    %164 = arith.index_cast %c1_i32 : i32 to index
    %c0_72 = arith.constant 0 : index
    %c0_73 = arith.constant 0 : index
    %165 = vector.load %arg15[%164, %c0_72, %c0_73] : memref<2x1x128xf32, #tpu.memory_space<vmem>>, vector<1x1x128xf32>
    %166 = vector.shape_cast %165 : vector<1x1x128xf32> to vector<1x128xf32>
    %167 = arith.index_cast %c1_i32 : i32 to index
    %c0_74 = arith.constant 0 : index
    %c0_75 = arith.constant 0 : index
    %168 = vector.load %arg16[%167, %c0_74, %c0_75] : memref<2x128x128xbf16, #tpu.memory_space<vmem>>, vector<1x128x128xbf16>
    %169 = vector.shape_cast %168 : vector<1x128x128xbf16> to vector<128x128xbf16>
    %170 = arith.index_cast %c1_i32 : i32 to index
    %c0_76 = arith.constant 0 : index
    %c0_77 = arith.constant 0 : index
    %171 = vector.load %arg17[%170, %c0_76, %c0_77] : memref<2x1x128xf32, #tpu.memory_space<vmem>>, vector<1x1x128xf32>
    %172 = vector.shape_cast %171 : vector<1x1x128xf32> to vector<1x128xf32>
    %173 = arith.index_cast %c1_i32 : i32 to index
    %c0_78 = arith.constant 0 : index
    %c0_79 = arith.constant 0 : index
    %174 = vector.load %arg18[%173, %c0_78, %c0_79] : memref<2x1x128xf32, #tpu.memory_space<vmem>>, vector<1x1x128xf32>
    %175 = vector.shape_cast %174 : vector<1x1x128xf32> to vector<1x128xf32>
    %176 = arith.index_cast %c1_i32 : i32 to index
    %c0_80 = arith.constant 0 : index
    %c0_81 = arith.constant 0 : index
    %177 = vector.load %arg19[%176, %c0_80, %c0_81] : memref<2x1x128xf32, #tpu.memory_space<vmem>>, vector<1x1x128xf32>
    %178 = vector.shape_cast %177 : vector<1x1x128xf32> to vector<1x128xf32>
    %cst_82 = arith.constant dense<0.000000e+00> : vector<16xf32>
    %179 = vector.multi_reduction <add>, %160, %cst_82 [1] : vector<16x128xf32> to vector<16xf32>
    %180 = vector.shape_cast %179 : vector<16xf32> to vector<16x1xf32>
    %181 = arith.mulf %160, %160 : vector<16x128xf32>
    %cst_83 = arith.constant dense<0.000000e+00> : vector<16xf32>
    %182 = vector.multi_reduction <add>, %181, %cst_83 [1] : vector<16x128xf32> to vector<16xf32>
    %183 = vector.shape_cast %182 : vector<16xf32> to vector<16x1xf32>
    %cst_84 = arith.constant 3.125000e-02 : f32
    %184 = vector.broadcast %cst_84 : f32 to vector<16x1xf32>
    %185 = arith.mulf %180, %184 : vector<16x1xf32>
    %cst_85 = arith.constant 3.125000e-02 : f32
    %186 = vector.broadcast %cst_85 : f32 to vector<16x1xf32>
    %187 = arith.mulf %183, %186 : vector<16x1xf32>
    %188 = arith.mulf %185, %185 : vector<16x1xf32>
    %189 = arith.subf %187, %188 : vector<16x1xf32>
    %190 = vector.broadcast %185 : vector<16x1xf32> to vector<16x128xf32>
    %191 = arith.subf %160, %190 : vector<16x128xf32>
    %cst_86 = arith.constant 9.99999974E-6 : f32
    %192 = vector.broadcast %cst_86 : f32 to vector<16x1xf32>
    %193 = arith.addf %189, %192 : vector<16x1xf32>
    %194 = math.rsqrt %193 : vector<16x1xf32>
    %195 = vector.broadcast %194 : vector<16x1xf32> to vector<16x128xf32>
    %196 = arith.mulf %191, %195 : vector<16x128xf32>
    %197 = vector.broadcast %163 : vector<1x128xf32> to vector<16x128xf32>
    %198 = arith.mulf %196, %197 : vector<16x128xf32>
    %199 = vector.broadcast %166 : vector<1x128xf32> to vector<16x128xf32>
    %200 = arith.addf %198, %199 : vector<16x128xf32>
    %cst_87 = arith.constant 0.000000e+00 : f32
    %201 = vector.broadcast %cst_87 : f32 to vector<16x128xf32>
    %202 = arith.maximumf %200, %201 : vector<16x128xf32>
    %203 = arith.truncf %202 : vector<16x128xf32> to vector<16x128xbf16>
    %cst_88 = arith.constant dense<0.000000e+00> : vector<16x128xf32>
    %204 = tpu.matmul %203, %169, %cst_88 {dimension_numbers = #tpu.dot_dimension_numbers<[1], [0], [0], [1], [0, 0, 1, 1], [], []>} : vector<16x128xbf16>, vector<128x128xbf16>, vector<16x128xf32> -> vector<16x128xf32>
    %205 = vector.broadcast %172 : vector<1x128xf32> to vector<16x128xf32>
    %206 = arith.addf %204, %205 : vector<16x128xf32>
    %cst_89 = arith.constant dense<0.000000e+00> : vector<16xf32>
    %207 = vector.multi_reduction <add>, %206, %cst_89 [1] : vector<16x128xf32> to vector<16xf32>
    %208 = vector.shape_cast %207 : vector<16xf32> to vector<16x1xf32>
    %209 = arith.mulf %206, %206 : vector<16x128xf32>
    %cst_90 = arith.constant dense<0.000000e+00> : vector<16xf32>
    %210 = vector.multi_reduction <add>, %209, %cst_90 [1] : vector<16x128xf32> to vector<16xf32>
    %211 = vector.shape_cast %210 : vector<16xf32> to vector<16x1xf32>
    %cst_91 = arith.constant 3.125000e-02 : f32
    %212 = vector.broadcast %cst_91 : f32 to vector<16x1xf32>
    %213 = arith.mulf %208, %212 : vector<16x1xf32>
    %cst_92 = arith.constant 3.125000e-02 : f32
    %214 = vector.broadcast %cst_92 : f32 to vector<16x1xf32>
    %215 = arith.mulf %211, %214 : vector<16x1xf32>
    %216 = arith.mulf %213, %213 : vector<16x1xf32>
    %217 = arith.subf %215, %216 : vector<16x1xf32>
    %218 = vector.broadcast %213 : vector<16x1xf32> to vector<16x128xf32>
    %219 = arith.subf %206, %218 : vector<16x128xf32>
    %cst_93 = arith.constant 9.99999974E-6 : f32
    %220 = vector.broadcast %cst_93 : f32 to vector<16x1xf32>
    %221 = arith.addf %217, %220 : vector<16x1xf32>
    %222 = math.rsqrt %221 : vector<16x1xf32>
    %223 = vector.broadcast %222 : vector<16x1xf32> to vector<16x128xf32>
    %224 = arith.mulf %219, %223 : vector<16x128xf32>
    %225 = vector.broadcast %175 : vector<1x128xf32> to vector<16x128xf32>
    %226 = arith.mulf %224, %225 : vector<16x128xf32>
    %227 = vector.broadcast %178 : vector<1x128xf32> to vector<16x128xf32>
    %228 = arith.addf %226, %227 : vector<16x128xf32>
    %cst_94 = arith.constant 0.000000e+00 : f32
    %229 = vector.broadcast %cst_94 : f32 to vector<16x128xf32>
    %230 = arith.maximumf %228, %229 : vector<16x128xf32>
    %231 = arith.addf %230, %150 : vector<16x128xf32>
    %c2_i32 = arith.constant 2 : i32
    %c0_95 = arith.constant 0 : index
    %c0_96 = arith.constant 0 : index
    %232 = vector.load %arg20[%c0_95, %c0_96] : memref<1x128xf32, #tpu.memory_space<vmem>>, vector<1x128xf32>
    %c0_97 = arith.constant 0 : index
    %c0_98 = arith.constant 0 : index
    %233 = vector.load %arg21[%c0_97, %c0_98] : memref<1x128xf32, #tpu.memory_space<vmem>>, vector<1x128xf32>
    %cst_99 = arith.constant dense<0.000000e+00> : vector<16xf32>
    %234 = vector.multi_reduction <add>, %231, %cst_99 [1] : vector<16x128xf32> to vector<16xf32>
    %235 = vector.shape_cast %234 : vector<16xf32> to vector<16x1xf32>
    %236 = arith.mulf %231, %231 : vector<16x128xf32>
    %cst_100 = arith.constant dense<0.000000e+00> : vector<16xf32>
    %237 = vector.multi_reduction <add>, %236, %cst_100 [1] : vector<16x128xf32> to vector<16xf32>
    %238 = vector.shape_cast %237 : vector<16xf32> to vector<16x1xf32>
    %cst_101 = arith.constant 3.125000e-02 : f32
    %239 = vector.broadcast %cst_101 : f32 to vector<16x1xf32>
    %240 = arith.mulf %235, %239 : vector<16x1xf32>
    %cst_102 = arith.constant 3.125000e-02 : f32
    %241 = vector.broadcast %cst_102 : f32 to vector<16x1xf32>
    %242 = arith.mulf %238, %241 : vector<16x1xf32>
    %243 = arith.mulf %240, %240 : vector<16x1xf32>
    %244 = arith.subf %242, %243 : vector<16x1xf32>
    %245 = vector.broadcast %240 : vector<16x1xf32> to vector<16x128xf32>
    %246 = arith.subf %231, %245 : vector<16x128xf32>
    %cst_103 = arith.constant 9.99999974E-6 : f32
    %247 = vector.broadcast %cst_103 : f32 to vector<16x1xf32>
    %248 = arith.addf %244, %247 : vector<16x1xf32>
    %249 = math.rsqrt %248 : vector<16x1xf32>
    %250 = vector.broadcast %249 : vector<16x1xf32> to vector<16x128xf32>
    %251 = arith.mulf %246, %250 : vector<16x128xf32>
    %252 = vector.broadcast %232 : vector<1x128xf32> to vector<16x128xf32>
    %253 = arith.mulf %251, %252 : vector<16x128xf32>
    %254 = vector.broadcast %233 : vector<1x128xf32> to vector<16x128xf32>
    %255 = arith.addf %253, %254 : vector<16x128xf32>
    %cst_104 = arith.constant 0.000000e+00 : f32
    %256 = vector.broadcast %cst_104 : f32 to vector<16x128xf32>
    %257 = arith.maximumf %255, %256 : vector<16x128xf32>
    %258 = arith.truncf %257 : vector<16x128xf32> to vector<16x128xbf16>
    %c0_105 = arith.constant 0 : index
    %c0_106 = arith.constant 0 : index
    %259 = vector.load %arg22[%c0_105, %c0_106] : memref<128x128xbf16, #tpu.memory_space<vmem>>, vector<128x128xbf16>
    %cst_107 = arith.constant dense<0.000000e+00> : vector<16x128xf32>
    %260 = tpu.matmul %258, %259, %cst_107 {dimension_numbers = #tpu.dot_dimension_numbers<[1], [0], [0], [1], [0, 0, 1, 1], [], []>} : vector<16x128xbf16>, vector<128x128xbf16>, vector<16x128xf32> -> vector<16x128xf32>
    %c0_108 = arith.constant 0 : index
    %c0_109 = arith.constant 0 : index
    %261 = vector.load %arg23[%c0_108, %c0_109] : memref<1x128xf32, #tpu.memory_space<vmem>>, vector<1x128xf32>
    %262 = vector.broadcast %261 : vector<1x128xf32> to vector<16x128xf32>
    %263 = arith.addf %260, %262 : vector<16x128xf32>
    %c0_110 = arith.constant 0 : index
    %c0_111 = arith.constant 0 : index
    %264 = vector.load %arg24[%c0_110, %c0_111] : memref<16x128xf32, #tpu.memory_space<vmem>>, vector<16x128xf32>
    tpu.vector_store %arg24[%c0_110, %c0_111], %263 {strides = array<i32>} : memref<16x128xf32, #tpu.memory_space<vmem>>, vector<16x128xf32>,
    return
  }
  func.func @transform_0(%arg0: i32) -> (i32, i32) {
    %c0_i32 = arith.constant 0 : i32
    %c0_i32_0 = arith.constant 0 : i32
    return %arg0, %c0_i32 : i32, i32
  }
  func.func @transform_1(%arg0: i32) -> (i32, i32) {
    %c0_i32 = arith.constant 0 : i32
    %c0_i32_0 = arith.constant 0 : i32
    %c0_i32_1 = arith.constant 0 : i32
    return %c0_i32, %c0_i32_0 : i32, i32
  }
  func.func @transform_2(%arg0: i32) -> (i32, i32) {
    %c0_i32 = arith.constant 0 : i32
    %c0_i32_0 = arith.constant 0 : i32
    %c0_i32_1 = arith.constant 0 : i32
    return %c0_i32, %c0_i32_0 : i32, i32
  }
  func.func @transform_3(%arg0: i32) -> (i32, i32) {
    %c0_i32 = arith.constant 0 : i32
    %c0_i32_0 = arith.constant 0 : i32
    %c0_i32_1 = arith.constant 0 : i32
    return %c0_i32, %c0_i32_0 : i32, i32
  }
  func.func @transform_4(%arg0: i32) -> (i32, i32) {
    %c0_i32 = arith.constant 0 : i32
    %c0_i32_0 = arith.constant 0 : i32
    %c0_i32_1 = arith.constant 0 : i32
    return %c0_i32, %c0_i32_0 : i32, i32
  }
  func.func @transform_5(%arg0: i32) -> (i32, i32) {
    %c0_i32 = arith.constant 0 : i32
    %c0_i32_0 = arith.constant 0 : i32
    %c0_i32_1 = arith.constant 0 : i32
    return %c0_i32, %c0_i32_0 : i32, i32
  }
  func.func @transform_6(%arg0: i32) -> (i32, i32) {
    %c0_i32 = arith.constant 0 : i32
    %c0_i32_0 = arith.constant 0 : i32
    %c0_i32_1 = arith.constant 0 : i32
    return %c0_i32, %c0_i32_0 : i32, i32
  }
  func.func @transform_7(%arg0: i32) -> (i32, i32) {
    %c0_i32 = arith.constant 0 : i32
    %c0_i32_0 = arith.constant 0 : i32
    %c0_i32_1 = arith.constant 0 : i32
    return %c0_i32, %c0_i32_0 : i32, i32
  }
  func.func @transform_8(%arg0: i32) -> (i32, i32) {
    %c0_i32 = arith.constant 0 : i32
    %c0_i32_0 = arith.constant 0 : i32
    %c0_i32_1 = arith.constant 0 : i32
    return %c0_i32, %c0_i32_0 : i32, i32
  }
  func.func @transform_9(%arg0: i32) -> (i32, i32) {
    %c0_i32 = arith.constant 0 : i32
    %c0_i32_0 = arith.constant 0 : i32
    %c0_i32_1 = arith.constant 0 : i32
    return %c0_i32, %c0_i32_0 : i32, i32
  }
  func.func @transform_10(%arg0: i32) -> (i32, i32) {
    %c0_i32 = arith.constant 0 : i32
    %c0_i32_0 = arith.constant 0 : i32
    %c0_i32_1 = arith.constant 0 : i32
    return %c0_i32, %c0_i32_0 : i32, i32
  }
  func.func @transform_11(%arg0: i32) -> (i32, i32, i32) {
    %c0_i32 = arith.constant 0 : i32
    %c0_i32_0 = arith.constant 0 : i32
    %c0_i32_1 = arith.constant 0 : i32
    %c0_i32_2 = arith.constant 0 : i32
    return %c0_i32, %c0_i32_0, %c0_i32_1 : i32, i32, i32
  }
  func.func @transform_12(%arg0: i32) -> (i32, i32, i32) {
    %c0_i32 = arith.constant 0 : i32
    %c0_i32_0 = arith.constant 0 : i32
    %c0_i32_1 = arith.constant 0 : i32
    %c0_i32_2 = arith.constant 0 : i32
    return %c0_i32, %c0_i32_0, %c0_i32_1 : i32, i32, i32
  }
  func.func @transform_13(%arg0: i32) -> (i32, i32, i32) {
    %c0_i32 = arith.constant 0 : i32
    %c0_i32_0 = arith.constant 0 : i32
    %c0_i32_1 = arith.constant 0 : i32
    %c0_i32_2 = arith.constant 0 : i32
    return %c0_i32, %c0_i32_0, %c0_i32_1 : i32, i32, i32
  }
  func.func @transform_14(%arg0: i32) -> (i32, i32, i32) {
    %c0_i32 = arith.constant 0 : i32
    %c0_i32_0 = arith.constant 0 : i32
    %c0_i32_1 = arith.constant 0 : i32
    %c0_i32_2 = arith.constant 0 : i32
    return %c0_i32, %c0_i32_0, %c0_i32_1 : i32, i32, i32
  }
  func.func @transform_15(%arg0: i32) -> (i32, i32, i32) {
    %c0_i32 = arith.constant 0 : i32
    %c0_i32_0 = arith.constant 0 : i32
    %c0_i32_1 = arith.constant 0 : i32
    %c0_i32_2 = arith.constant 0 : i32
    return %c0_i32, %c0_i32_0, %c0_i32_1 : i32, i32, i32
  }
  func.func @transform_16(%arg0: i32) -> (i32, i32, i32) {
    %c0_i32 = arith.constant 0 : i32
    %c0_i32_0 = arith.constant 0 : i32
    %c0_i32_1 = arith.constant 0 : i32
    %c0_i32_2 = arith.constant 0 : i32
    return %c0_i32, %c0_i32_0, %c0_i32_1 : i32, i32, i32
  }
  func.func @transform_17(%arg0: i32) -> (i32, i32, i32) {
    %c0_i32 = arith.constant 0 : i32
    %c0_i32_0 = arith.constant 0 : i32
    %c0_i32_1 = arith.constant 0 : i32
    %c0_i32_2 = arith.constant 0 : i32
    return %c0_i32, %c0_i32_0, %c0_i32_1 : i32, i32, i32
  }
  func.func @transform_18(%arg0: i32) -> (i32, i32, i32) {
    %c0_i32 = arith.constant 0 : i32
    %c0_i32_0 = arith.constant 0 : i32
    %c0_i32_1 = arith.constant 0 : i32
    %c0_i32_2 = arith.constant 0 : i32
    return %c0_i32, %c0_i32_0, %c0_i32_1 : i32, i32, i32
  }
  func.func @transform_19(%arg0: i32) -> (i32, i32) {
    %c0_i32 = arith.constant 0 : i32
    %c0_i32_0 = arith.constant 0 : i32
    %c0_i32_1 = arith.constant 0 : i32
    return %c0_i32, %c0_i32_0 : i32, i32
  }
  func.func @transform_20(%arg0: i32) -> (i32, i32) {
    %c0_i32 = arith.constant 0 : i32
    %c0_i32_0 = arith.constant 0 : i32
    %c0_i32_1 = arith.constant 0 : i32
    return %c0_i32, %c0_i32_0 : i32, i32
  }
  func.func @transform_21(%arg0: i32) -> (i32, i32) {
    %c0_i32 = arith.constant 0 : i32
    %c0_i32_0 = arith.constant 0 : i32
    %c0_i32_1 = arith.constant 0 : i32
    return %c0_i32, %c0_i32_0 : i32, i32
  }
  func.func @transform_22(%arg0: i32) -> (i32, i32) {
    %c0_i32 = arith.constant 0 : i32
    %c0_i32_0 = arith.constant 0 : i32
    %c0_i32_1 = arith.constant 0 : i32
    return %c0_i32, %c0_i32_0 : i32, i32
  }
  func.func @transform_23(%arg0: i32) -> (i32, i32) {
    %c0_i32 = arith.constant 0 : i32
    %c0_i32_0 = arith.constant 0 : i32
    return %arg0, %c0_i32 : i32, i32
  }
}

</mosaic_0001>

<bundles_post_ra>
// kernel: resnet_forward.1
= control target key start
LH: loop header
LB: loop body
LE: loop exit
PB: predicated region body
PF: predicated region fallthrough
CT: control target
= control target key end

     0   :  { %vm92_vm0 = vcmask 1043456   ;;  %vm85_vm1 = vcmask 31744   ;;  %v1659_v12 = vmov 0.0   ;;  %vm1660_vm2 = vmmov 0   ;;  %s2103_s1 = inlined_call_operand.vmem [shape: f32[4,128], index: 1, kind: input, shape index: {}]   ;;  %s2104_s0 = inlined_call_operand.vmem [shape: f32[16,4], index: 0, kind: input, shape index: {}]   ;;  %s2105_s9 = inlined_call_operand.vmem [shape: f32[4,128], index: 9, kind: input, shape index: {}]   ;;  %s2106_s2 = inlined_call_operand.vmem [shape: f32[1,128], index: 2, kind: input, shape index: {}]   ;;  %s2107_s5 = inlined_call_operand.vmem [shape: bf16[128,128], index: 5, kind: input, shape index: {}]   ;;  %s2108_s3 = inlined_call_operand.vmem [shape: f32[1,128], index: 3, kind: input, shape index: {}]   ;;  %s2109_s4 = inlined_call_operand.vmem [shape: f32[1,128], index: 4, kind: input, shape index: {}]   ;;  %s2110_s6 = inlined_call_operand.vmem [shape: f32[1,128], index: 6, kind: input, shape index: {}]   ;;  %s2111_s11 = inlined_call_operand.vmem [shape: bf16[2,128,128], index: 11, kind: input, shape index: {}]   ;;  %s2112_s7 = inlined_call_operand.vmem [shape: f32[1,128], index: 7, kind: input, shape index: {}]   ;;  %s2113_s8 = inlined_call_operand.vmem [shape: f32[1,128], index: 8, kind: input, shape index: {}]   ;;  %s2114_s10 = inlined_call_operand.vmem [shape: f32[1,128], index: 10, kind: input, shape index: {}]   ;;  %s2115_s12 = inlined_call_operand.vmem [shape: f32[2,1,128], index: 12, kind: input, shape index: {}]   ;;  %s2116_s15 = inlined_call_operand.vmem [shape: bf16[2,128,128], index: 15, kind: input, shape index: {}]   ;;  %s2117_s13 = inlined_call_operand.vmem [shape: f32[2,1,128], index: 13, kind: input, shape index: {}]   ;;  %s2118_s14 = inlined_call_operand.vmem [shape: f32[2,1,128], index: 14, kind: input, shape index: {}]   ;;  %s2119_s16 = inlined_call_operand.vmem [shape: f32[2,1,128], index: 16, kind: input, shape index: {}]   ;;  %s2120_s17 = inlined_call_operand.vmem [shape: f32[2,1,128], index: 17, kind: input, shape index: {}]   ;;  %s2121_s18 = inlined_call_operand.vmem [shape: f32[2,1,128], index: 18, kind: input, shape index: {}]   ;;  %s2122_s21 = inlined_call_operand.vmem [shape: bf16[128,128], index: 21, kind: input, shape index: {}]   ;;  %s2123_s19 = inlined_call_operand.vmem [shape: f32[1,128], index: 19, kind: input, shape index: {}]   ;;  %s2124_s20 = inlined_call_operand.vmem [shape: f32[1,128], index: 20, kind: input, shape index: {}]   ;;  %s2125_s22 = inlined_call_operand.vmem [shape: f32[1,128], index: 22, kind: input, shape index: {}]   ;;  %s2126_s23 = inlined_call_operand.vmem [shape: f32[16,128], index: 23, kind: output, shape index: {}]  }
   0x1   :  { %2129 = sst [smem:[#allocation2_spill]] %s2103_s1  ;;  %v1591_v60 = vld [vmem:[%s2111_s11] sm:$0xff]   ;;  %v1592_v61 = vld [vmem:[%s2111_s11 + $0x8] sm:$0xff]   ;;  %v1593_v62 = vld [vmem:[%s2111_s11 + $0x10] sm:$0xff]  }
   0x2   :  { %2130 = sst [smem:[#allocation3_spill]] %s2104_s0  ;;  %s2137_s24 = sld [smem:[#allocation2_spill]]  ;;  %v1594_v63 = vld [vmem:[%s2111_s11 + $0x18] sm:$0xff]  }
   0x3   :  { %2131 = sst [smem:[#allocation4_spill]] %s2105_s9  ;;  %s2138_s0 = sld [smem:[#allocation3_spill]] }
   0x4   :  { %2132 = sst [smem:[#allocation5_spill]] %s2106_s2 }
   0x5   :  { %2133 = sst [smem:[#allocation6_spill]] %s2107_s5  ;;  %s2140_s2 = sld [smem:[#allocation5_spill]] }
   0x6   :  { %2134 = sst [smem:[#allocation7_spill]] %s2108_s3  ;;  %s2141_s30 = sld [smem:[#allocation6_spill]] }
   0x7   :  { %2135 = sst [smem:[#allocation8_spill]] %s2109_s4  ;;  %s2142_s25 = sld [smem:[#allocation7_spill]] }
   0x8   :  { %2136 = sst [smem:[#allocation9_spill]] %s2110_s6  ;;  %v171_v0 = vld [vmem:[%s2137_s24] sm:$0xf]  ;;  %s2139_s6 = sld [smem:[#allocation4_spill]] }
   0x9   :  { %v75_v1 = vld [vmem:[%s2138_s0] sm:$0xff]  ;;  %v76_v2 = vld [vmem:[%s2138_s0 + $0x8] sm:$0xff]  ;;  %1456 = vmatprep.subr.msk.mxu1 %vm92_vm0, %v171_v0  ;;  %s2143_s4 = sld [smem:[#allocation8_spill]]  ;;  %s2144_s27 = sld [smem:[#allocation9_spill]] }
   0xa   :  { %1458 = vmatprep.mubr.msk.f32.mxu1 %vm85_vm1, %v75_v1  ;;  %1457 = vmatpush3.msk.msra.mxu1 %vm92_vm0, %v171_v0  ;;  %v1595_v0 = vld [vmem:[%s2111_s11 + $0x20] sm:$0xff]  }
   0xb   :  { %1453 = vmatprep.mubr.msk.f32.mxu0 %vm85_vm1, %v75_v1  ;;  %1459 = vmatmul.mubr.msk.f32.vlgmr.msra.gmra.mrb[0].mxu1 %vm85_vm1, %v76_v2  ;;  %v1281_v4 = vld [vmem:[%s2140_s2] ss:$0 sm:$0xff]  ;;  %v1596_v1 = vld [vmem:[%s2111_s11 + $0x28] sm:$0xff]  }
   0xc   :  { %v1583_v11 = vld [vmem:[%s2141_s30] sm:$0xff]   ;;  %1481 = vmatprep.subr.bf16.mxu1 %v1659_v12  ;;  %v1584_v13 = vld [vmem:[%s2141_s30 + $0x8] sm:$0xff]   ;;  %v1585_v14 = vld [vmem:[%s2141_s30 + $0x10] sm:$0xff]   ;;  %1497 = vmatprep.mubr.msk.bf16.mxu1 %vm1660_vm2, %v1659_v12 }
   0xd   :  { %v1586_v15 = vld [vmem:[%s2141_s30 + $0x18] sm:$0xff]   ;;  %v1587_v16 = vld [vmem:[%s2141_s30 + $0x20] sm:$0xff]   ;;  %v1588_v17 = vld [vmem:[%s2141_s30 + $0x28] sm:$0xff]   ;;  %1482 = vmatpush3.bf16.msra.mxu1 %v1591_v60 }
   0xe   :  { %v77_v3 = vld [vmem:[%s2139_s6] sm:$0xf]  ;;  %v1589_v18 = vld [vmem:[%s2141_s30 + $0x30] sm:$0xff]   ;;  %v1590_v19 = vld [vmem:[%s2141_s30 + $0x38] sm:$0xff]   ;;  %1483 = vmatprep.subr.bf16.mxu1 %v1659_v12 }
   0xf   :  { %1451 = vmatprep.subr.msk.mxu0 %vm92_vm0, %v77_v3  ;;  %v1285_v38 = vld [vmem:[%s2142_s25] ss:$0 sm:$0xff] }
  0x10   :  { %1452 = vmatpush3.msk.msra.mxu0 %vm92_vm0, %v77_v3  ;;  %v1286_v43 = vld [vmem:[%s2143_s4] ss:$0 sm:$0xff]  ;;  %v1598_v3 = vld [vmem:[%s2111_s11 + $0x38] sm:$0xff]  }
  0x11   :  { %1454 = vmatmul.mubr.msk.f32.vlgmr.msra.gmra.mrb[0].mxu0 %vm85_vm1, %v76_v2  ;;  %1461 = vmatprep.subr.bf16.mxu0 %v1659_v12  ;;  %v1287_v51 = vld [vmem:[%s2144_s27] ss:$0 sm:$0xff]  ;;  %v1597_v2 = vld [vmem:[%s2111_s11 + $0x30] sm:$0xff]  }
  0x12   :  { %1462 = vmatpush3.bf16.msra.mxu0 %v1583_v11  ;;  %1477 = vmatprep.mubr.msk.bf16.mxu0 %vm1660_vm2, %v1659_v12 }
  0x13   :  { %1463 = vmatprep.subr.bf16.mxu0 %v1659_v12  ;;  %1484 = vmatpush3.bf16.msra.mxu1 %v1592_v61 }
  0x14   :  { %1485 = vmatprep.subr.bf16.mxu1 %v1659_v12 }
  0x16   :  { %1464 = vmatpush3.bf16.msra.mxu0 %v1584_v13 }
  0x17   :  { %1465 = vmatprep.subr.bf16.mxu0 %v1659_v12  ;;  %1486 = vmatpush3.bf16.msra.mxu1 %v1593_v62 }
  0x18   :  { %1487 = vmatprep.subr.bf16.mxu1 %v1659_v12 }
  0x1a   :  { %1466 = vmatpush3.bf16.msra.mxu0 %v1585_v14 }
  0x1b   :  { %1467 = vmatprep.subr.bf16.mxu0 %v1659_v12  ;;  %1488 = vmatpush3.bf16.msra.mxu1 %v1594_v63 }
  0x1c   :  { %1489 = vmatprep.subr.bf16.mxu1 %v1659_v12 }
  0x1e   :  { %1468 = vmatpush3.bf16.msra.mxu0 %v1586_v15 }
  0x1f   :  { %1469 = vmatprep.subr.bf16.mxu0 %v1659_v12  ;;  %1490 = vmatpush3.bf16.msra.mxu1 %v1595_v0 }
  0x20   :  { %1491 = vmatprep.subr.bf16.mxu1 %v1659_v12 }
  0x22   :  { %1470 = vmatpush3.bf16.msra.mxu0 %v1587_v16 }
  0x23   :  { %1471 = vmatprep.subr.bf16.mxu0 %v1659_v12  ;;  %1492 = vmatpush3.bf16.msra.mxu1 %v1596_v1 }
  0x24   :  { %1493 = vmatprep.subr.bf16.mxu1 %v1659_v12 }
  0x26   :  { %1472 = vmatpush3.bf16.msra.mxu0 %v1588_v17 }
  0x27   :  { %1473 = vmatprep.subr.bf16.mxu0 %v1659_v12  ;;  %1494 = vmatpush3.bf16.msra.mxu1 %v1597_v2 }
  0x28   :  { %1495 = vmatprep.subr.bf16.mxu1 %v1659_v12 }
  0x2a   :  { %1474 = vmatpush3.bf16.msra.mxu0 %v1589_v18 }
  0x2b   :  { %1475 = vmatprep.subr.bf16.mxu0 %v1659_v12  ;;  %1496 = vmatpush3.bf16.msra.mxu1 %v1598_v3 }
  0x2c   :  { %1521 = vmatprep.subr.bf16.mxu1 %v1659_v12 }
  0x2e   :  { %1476 = vmatpush3.bf16.msra.mxu0 %v1590_v19 }
  0x2f   :  { %1501 = vmatprep.subr.bf16.mxu0 %v1659_v12 }
  0xde   :  { %v1460_v5 = vpop.f32.mrb[0].mxu1 }
  0xdf   :  { %v248_v6 = vpop.f32.mrb[1].mxu1  ;;  %v1798_v8 = vadd.f32 %v1460_v5, %v1281_v4 }
  0xe0   :  { %v1796_v7 = vadd.f32 %v1281_v4, %v248_v6 }
  0xe1   :  { %v283_v10 = vmul.f32 %v1798_v8, %v1798_v8 }
  0xe2   :  { %278 = vadd.xlane.f32.xlu0 %v1796_v7  ;;  %v282_v9 = vmul.f32 %v1796_v7, %v1796_v7 }
  0xe4   :  { %284 = vadd.xlane.f32.xlu1 %v282_v9  ;;  %v1844_v20 = vpop.f32.mrb[0].mxu0 }
  0xe5   :  { %v1846_v21 = vpop.f32.mrb[1].mxu0 }
  0xe6   :  { %280 = vadd.xlane.f32.xlu0 %v1798_v8 }
  0xe8   :  { %286 = vadd.xlane.f32.xlu1 %v283_v10 }
 0x16f   :  { %v279_v22 = vpop.xlane.xlu0 %278 }
 0x170   :  { %v288_v23 = vmul.f32 0.03125, %v279_v22 }
 0x171   :  { %v285_v24 = vpop.xlane.xlu1 %284 }
 0x172   :  { %v292_v25 = vmul.f32 %v288_v23, %v288_v23  ;;  %v290_v26 = vmul.f32 0.03125, %v285_v24  ;;  %v296_v36 = vsub.f32 %v1796_v7, %v288_v23  ;;  %v1296_v23 = vld [vmem:[%s2112_s7] ss:$0 sm:$0xff] }
 0x173   :  { %v281_v27 = vpop.xlane.xlu0 %280 }
 0x174   :  { %v294_v28 = vsub.f32 %v290_v26, %v292_v25  ;;  %v289_v29 = vmul.f32 0.03125, %v281_v27  ;;  %v1297_v27 = vld [vmem:[%s2113_s8] ss:$0 sm:$0xff] }
 0x175   :  { %v287_v30 = vpop.xlane.xlu1 %286 }
 0x176   :  { %v298_v31 = vadd.f32 1e-05, %v294_v28  ;;  %v293_v32 = vmul.f32 %v289_v29, %v289_v29  ;;  %v291_v33 = vmul.f32 0.03125, %v287_v30  ;;  %v297_v40 = vsub.f32 %v1798_v8, %v289_v29 }
 0x178   :  { %1631 = vrsqrt.f32 %v298_v31  ;;  %v295_v34 = vsub.f32 %v291_v33, %v293_v32  ;;  %v1277_v32 = vld [vmem:[%s2114_s10] ss:$0 sm:$0xff] }
 0x17a   :  { %v299_v35 = vadd.f32 1e-05, %v295_v34 }
 0x17c   :  { %1633 = vrsqrt.f32 %v299_v35  ;;  %v168_v35 = vadd.f32 %v1844_v20, %v1277_v32 }
 0x182   :  { %v1632_v37 = vpop.eup %1631 }
 0x183   :  { %v302_v39 = vmul.f32 %v1632_v37, %v296_v36  ;;  %v163_v36 = vadd.f32 %v1277_v32, %v1846_v21 }
 0x185   :  { %v310_v41 = vmul.f32 %v1285_v38, %v302_v39 }
 0x186   :  { %v1634_v42 = vpop.eup %1633 }
 0x187   :  { %v303_v44 = vmul.f32 %v1634_v42, %v297_v40  ;;  %v318_v46 = vadd.f32 %v1286_v43, %v310_v41  ;;  %v1298_v41 = vld [vmem:[%s2115_s12] ss:$0 sm:$0xff] }
 0x189   :  { %v311_v45 = vmul.f32 %v1285_v38, %v303_v44  ;;  %v320_v48 = vmax.f32 %v318_v46, 0.0 }
 0x18b   :  { %v319_v47 = vadd.f32 %v1286_v43, %v311_v45 }
 0x18d   :  { %v321_v49 = vmax.f32 %v319_v47, 0.0 }
 0x18f   :  { %v322_v50 = vpack.c.bf16 %v321_v49, %v320_v48  ;;  %v1599_v48 = vld [vmem:[%s2116_s15] sm:$0xff]   ;;  %v1600_v49 = vld [vmem:[%s2116_s15 + $0x8] sm:$0xff]  }
 0x191   :  { %1478 = vmatmul.mubr.bf16.vlgmr.msra.gmra.mrb[4].mxu0 %v322_v50  ;;  %v1601_v50 = vld [vmem:[%s2116_s15 + $0x10] sm:$0xff]  }
 0x192   :  { %1517 = vmatprep.mubr.msk.bf16.mxu0 %vm1660_vm2, %v1659_v12  ;;  %1502 = vmatpush3.bf16.msra.mxu0 %v1599_v48 }
 0x193   :  { %1503 = vmatprep.subr.bf16.mxu0 %v1659_v12 }
 0x196   :  { %1504 = vmatpush3.bf16.msra.mxu0 %v1600_v49 }
 0x197   :  { %1505 = vmatprep.subr.bf16.mxu0 %v1659_v12 }
 0x19a   :  { %1506 = vmatpush3.bf16.msra.mxu0 %v1601_v50 }
 0x19b   :  { %1507 = vmatprep.subr.bf16.mxu0 %v1659_v12 }
 0x264   :  { %v411_v52 = vpop.f32.mrb[4].mxu0 }
 0x265   :  { %v412_v53 = vadd.f32 %v1287_v51, %v411_v52  ;;  %v1479_v54 = vpop.f32.mrb[5].mxu0  ;;  %v1603_v52 = vld [vmem:[%s2116_s15 + $0x20] sm:$0xff]  }
 0x266   :  { %v414_v55 = vpop.f32.mrb[6].mxu0  ;;  %v1605_v54 = vld [vmem:[%s2116_s15 + $0x30] sm:$0xff]  }
 0x267   :  { %v415_v56 = vadd.f32 %v1287_v51, %v414_v55  ;;  %418 = vadd.xlane.f32.xlu0 %v412_v53  ;;  %v1480_v57 = vpop.f32.mrb[7].mxu0  ;;  %v422_v58 = vmul.f32 %v412_v53, %v412_v53  ;;  %v1602_v51 = vld [vmem:[%s2116_s15 + $0x18] sm:$0xff]  }
 0x268   :  { %1508 = vmatpush3.bf16.msra.mxu0 %v1602_v51  ;;  %v1606_v55 = vld [vmem:[%s2116_s15 + $0x38] sm:$0xff]  }
 0x269   :  { %420 = vadd.xlane.f32.xlu1 %v415_v56  ;;  %v423_v59 = vmul.f32 %v415_v56, %v415_v56  ;;  %1509 = vmatprep.subr.bf16.mxu0 %v1659_v12 }
 0x26b   :  { %424 = vadd.xlane.f32.xlu0 %v422_v58 }
 0x26c   :  { %1510 = vmatpush3.bf16.msra.mxu0 %v1603_v52 }
 0x26d   :  { %426 = vadd.xlane.f32.xlu1 %v423_v59  ;;  %1511 = vmatprep.subr.bf16.mxu0 %v1659_v12 }
 0x2f4   :  { %v419_v4 = vpop.xlane.xlu0 %418 }
 0x2f5   :  { %v428_v5 = vmul.f32 0.03125, %v419_v4 }
 0x2f6   :  { %v421_v6 = vpop.xlane.xlu1 %420 }
 0x2f7   :  { %v429_v7 = vmul.f32 0.03125, %v421_v6  ;;  %v432_v9 = vmul.f32 %v428_v5, %v428_v5  ;;  %v436_v19 = vsub.f32 %v412_v53, %v428_v5  ;;  %v1604_v53 = vld [vmem:[%s2116_s15 + $0x28] sm:$0xff]  }
 0x2f8   :  { %v425_v8 = vpop.xlane.xlu0 %424  ;;  %1512 = vmatpush3.bf16.msra.mxu0 %v1604_v53 }
 0x2f9   :  { %v430_v10 = vmul.f32 0.03125, %v425_v8  ;;  %v433_v13 = vmul.f32 %v429_v7, %v429_v7  ;;  %v437_v24 = vsub.f32 %v415_v56, %v429_v7  ;;  %1513 = vmatprep.subr.bf16.mxu0 %v1659_v12  ;;  %v1307_v8 = vld [vmem:[%s2117_s13] ss:$0 sm:$0xff] }
 0x2fa   :  { %v427_v11 = vpop.xlane.xlu1 %426 }
 0x2fb   :  { %v434_v14 = vsub.f32 %v430_v10, %v432_v9  ;;  %v431_v15 = vmul.f32 0.03125, %v427_v11 }
 0x2fc   :  { %1514 = vmatpush3.bf16.msra.mxu0 %v1605_v54 }
 0x2fd   :  { %v438_v16 = vadd.f32 1e-05, %v434_v14  ;;  %v435_v17 = vsub.f32 %v431_v15, %v433_v13  ;;  %1515 = vmatprep.subr.bf16.mxu0 %v1659_v12  ;;  %v1308_v13 = vld [vmem:[%s2118_s14] ss:$0 sm:$0xff] }
 0x2ff   :  { %1635 = vrsqrt.f32 %v438_v16  ;;  %v439_v18 = vadd.f32 1e-05, %v435_v17 }
 0x300   :  { %1516 = vmatpush3.bf16.msra.mxu0 %v1606_v55 }
 0x301   :  { %1637 = vrsqrt.f32 %v439_v18  ;;  %1541 = vmatprep.subr.bf16.mxu0 %v1659_v12 }
 0x309   :  { %v1636_v22 = vpop.eup %1635 }
 0x30a   :  { %v442_v25 = vmul.f32 %v1636_v22, %v436_v19 }
 0x30b   :  { %v1638_v26 = vpop.eup %1637 }
 0x30c   :  { %v443_v28 = vmul.f32 %v1638_v26, %v437_v24  ;;  %v450_v29 = vmul.f32 %v1296_v23, %v442_v25  ;;  %v1309_v24 = vld [vmem:[%s2119_s16] ss:$0 sm:$0xff] }
 0x30e   :  { %v451_v30 = vmul.f32 %v1296_v23, %v443_v28  ;;  %v458_v31 = vadd.f32 %v1297_v27, %v450_v29 }
 0x310   :  { %v459_v33 = vadd.f32 %v1297_v27, %v451_v30  ;;  %v460_v34 = vmax.f32 %v458_v31, 0.0 }
 0x312   :  { %v461_v37 = vmax.f32 %v459_v33, 0.0  ;;  %v1904_v38 = vadd.f32 %v460_v34, %v163_v36  ;;  %v1607_v33 = vld [vmem:[%s2111_s11 + $0x40] sm:$0xff]   ;;  %v1608_v34 = vld [vmem:[%s2111_s11 + $0x48] sm:$0xff]   ;;  %v1610_v36 = vld [vmem:[%s2111_s11 + $0x58] sm:$0xff]  }
 0x314   :  { %v1906_v39 = vadd.f32 %v461_v37, %v168_v35  ;;  %v1609_v35 = vld [vmem:[%s2111_s11 + $0x50] sm:$0xff]   ;;  %v1611_v37 = vld [vmem:[%s2111_s11 + $0x60] sm:$0xff]  }
 0x316   :  { %v464_v40 = vpack.c.bf16 %v1906_v39, %v1904_v38 }
 0x318   :  { %1498 = vmatmul.mubr.bf16.vlgmr.msra.gmra.mrb[4].mxu1 %v464_v40  ;;  %v1612_v40 = vld [vmem:[%s2111_s11 + $0x68] sm:$0xff]  }
 0x319   :  { %1537 = vmatprep.mubr.msk.bf16.mxu1 %vm1660_vm2, %v1659_v12  ;;  %1522 = vmatpush3.bf16.msra.mxu1 %v1607_v33 }
 0x31a   :  { %1523 = vmatprep.subr.bf16.mxu1 %v1659_v12 }
 0x31d   :  { %1524 = vmatpush3.bf16.msra.mxu1 %v1608_v34 }
 0x31e   :  { %1525 = vmatprep.subr.bf16.mxu1 %v1659_v12 }
 0x321   :  { %1526 = vmatpush3.bf16.msra.mxu1 %v1609_v35 }
 0x322   :  { %1527 = vmatprep.subr.bf16.mxu1 %v1659_v12 }
 0x325   :  { %1528 = vmatpush3.bf16.msra.mxu1 %v1610_v36 }
 0x326   :  { %1529 = vmatprep.subr.bf16.mxu1 %v1659_v12 }
 0x329   :  { %1530 = vmatpush3.bf16.msra.mxu1 %v1611_v37 }
 0x32a   :  { %1531 = vmatprep.subr.bf16.mxu1 %v1659_v12 }
 0x32d   :  { %1532 = vmatpush3.bf16.msra.mxu1 %v1612_v40 }
 0x32e   :  { %1533 = vmatprep.subr.bf16.mxu1 %v1659_v12 }
 0x3eb   :  { %v570_v42 = vpop.f32.mrb[4].mxu1 }
 0x3ec   :  { %v571_v20 = vadd.f32 %v1298_v41, %v570_v42  ;;  %v1499_v43 = vpop.f32.mrb[5].mxu1  ;;  %v1614_v42 = vld [vmem:[%s2111_s11 + $0x78] sm:$0xff]  }
 0x3ed   :  { %v573_v21 = vpop.f32.mrb[6].mxu1 }
 0x3ee   :  { %v574_v44 = vadd.f32 %v1298_v41, %v573_v21  ;;  %598 = vadd.xlane.f32.xlu0 %v571_v20  ;;  %v1500_v45 = vpop.f32.mrb[7].mxu1  ;;  %v602_v46 = vmul.f32 %v571_v20, %v571_v20  ;;  %v1613_v41 = vld [vmem:[%s2111_s11 + $0x70] sm:$0xff]  }
 0x3ef   :  { %1534 = vmatpush3.bf16.msra.mxu1 %v1613_v41 }
 0x3f0   :  { %600 = vadd.xlane.f32.xlu1 %v574_v44  ;;  %v603_v47 = vmul.f32 %v574_v44, %v574_v44  ;;  %1535 = vmatprep.subr.bf16.mxu1 %v1659_v12 }
 0x3f2   :  { %604 = vadd.xlane.f32.xlu0 %v602_v46 }
 0x3f3   :  { %1536 = vmatpush3.bf16.msra.mxu1 %v1614_v42 }
 0x3f4   :  { %606 = vadd.xlane.f32.xlu1 %v603_v47  ;;  %1561 = vmatprep.subr.bf16.mxu1 %v1659_v12 }
 0x47b   :  { %v599_v56 = vpop.xlane.xlu0 %598 }
 0x47c   :  { %v608_v57 = vmul.f32 0.03125, %v599_v56 }
 0x47d   :  { %v601_v58 = vpop.xlane.xlu1 %600 }
 0x47e   :  { %v609_v59 = vmul.f32 0.03125, %v601_v58  ;;  %v612_v61 = vmul.f32 %v608_v57, %v608_v57  ;;  %v616_v6 = vsub.f32 %v571_v20, %v608_v57  ;;  %v1318_v57 = vld [vmem:[%s2120_s17] ss:$0 sm:$0xff] }
 0x47f   :  { %v605_v60 = vpop.xlane.xlu0 %604 }
 0x480   :  { %v610_v62 = vmul.f32 0.03125, %v605_v60  ;;  %v613_v0 = vmul.f32 %v609_v59, %v609_v59  ;;  %v617_v9 = vsub.f32 %v574_v44, %v609_v59 }
 0x481   :  { %v607_v63 = vpop.xlane.xlu1 %606 }
 0x482   :  { %v614_v1 = vsub.f32 %v610_v62, %v612_v61  ;;  %v611_v2 = vmul.f32 0.03125, %v607_v63  ;;  %v1319_v61 = vld [vmem:[%s2121_s18] ss:$0 sm:$0xff] }
 0x484   :  { %v618_v3 = vadd.f32 1e-05, %v614_v1  ;;  %v615_v4 = vsub.f32 %v611_v2, %v613_v0 }
 0x486   :  { %1639 = vrsqrt.f32 %v618_v3  ;;  %v619_v5 = vadd.f32 1e-05, %v615_v4 }
 0x488   :  { %1641 = vrsqrt.f32 %v619_v5 }
 0x490   :  { %v1640_v7 = vpop.eup %1639 }
 0x491   :  { %v622_v10 = vmul.f32 %v1640_v7, %v616_v6 }
 0x492   :  { %v1642_v11 = vpop.eup %1641 }
 0x493   :  { %v623_v14 = vmul.f32 %v1642_v11, %v617_v9  ;;  %v630_v15 = vmul.f32 %v1307_v8, %v622_v10 }
 0x495   :  { %v631_v16 = vmul.f32 %v1307_v8, %v623_v14  ;;  %v638_v17 = vadd.f32 %v1308_v13, %v630_v15  ;;  %v1337_v8 = vld [vmem:[%s2115_s12 + $0x1] ss:$0 sm:$0xff] }
 0x497   :  { %v639_v18 = vadd.f32 %v1308_v13, %v631_v16  ;;  %v640_v19 = vmax.f32 %v638_v17, 0.0  ;;  %v1615_v16 = vld [vmem:[%s2116_s15 + $0x40] sm:$0xff]   ;;  %v1616_v17 = vld [vmem:[%s2116_s15 + $0x48] sm:$0xff]  }
 0x499   :  { %v641_v22 = vmax.f32 %v639_v18, 0.0  ;;  %v1617_v18 = vld [vmem:[%s2116_s15 + $0x50] sm:$0xff]  }
 0x49b   :  { %v642_v23 = vpack.c.bf16 %v641_v22, %v640_v19  ;;  %v1618_v19 = vld [vmem:[%s2116_s15 + $0x58] sm:$0xff]   ;;  %v1619_v22 = vld [vmem:[%s2116_s15 + $0x60] sm:$0xff]  }
 0x49d   :  { %1518 = vmatmul.mubr.bf16.vlgmr.msra.gmra.mrb[8].mxu0 %v642_v23  ;;  %v1620_v23 = vld [vmem:[%s2116_s15 + $0x68] sm:$0xff]  }
 0x49e   :  { %1557 = vmatprep.mubr.msk.bf16.mxu0 %vm1660_vm2, %v1659_v12  ;;  %1542 = vmatpush3.bf16.msra.mxu0 %v1615_v16 }
 0x49f   :  { %1543 = vmatprep.subr.bf16.mxu0 %v1659_v12 }
 0x4a2   :  { %1544 = vmatpush3.bf16.msra.mxu0 %v1616_v17  ;;  %v1378_v17 = vld [vmem:[%s2120_s17 + $0x1] ss:$0 sm:$0xff] }
 0x4a3   :  { %1545 = vmatprep.subr.bf16.mxu0 %v1659_v12 }
 0x4a6   :  { %1546 = vmatpush3.bf16.msra.mxu0 %v1617_v18 }
 0x4a7   :  { %1547 = vmatprep.subr.bf16.mxu0 %v1659_v12 }
 0x4aa   :  { %1548 = vmatpush3.bf16.msra.mxu0 %v1618_v19 }
 0x4ab   :  { %1549 = vmatprep.subr.bf16.mxu0 %v1659_v12 }
 0x4ae   :  { %1550 = vmatpush3.bf16.msra.mxu0 %v1619_v22 }
 0x4af   :  { %1551 = vmatprep.subr.bf16.mxu0 %v1659_v12 }
 0x4b2   :  { %1552 = vmatpush3.bf16.msra.mxu0 %v1620_v23  ;;  %v1379_v23 = vld [vmem:[%s2121_s18 + $0x1] ss:$0 sm:$0xff] }
 0x4b3   :  { %1553 = vmatprep.subr.bf16.mxu0 %v1659_v12 }
 0x570   :  { %v731_v25 = vpop.f32.mrb[8].mxu0 }
 0x571   :  { %v732_v26 = vadd.f32 %v1309_v24, %v731_v25  ;;  %v1519_v27 = vpop.f32.mrb[9].mxu0  ;;  %v1622_v25 = vld [vmem:[%s2116_s15 + $0x78] sm:$0xff]  }
 0x572   :  { %v734_v28 = vpop.f32.mrb[10].mxu0 }
 0x573   :  { %v735_v29 = vadd.f32 %v1309_v24, %v734_v28  ;;  %738 = vadd.xlane.f32.xlu0 %v732_v26  ;;  %v1520_v30 = vpop.f32.mrb[11].mxu0  ;;  %v742_v31 = vmul.f32 %v732_v26, %v732_v26  ;;  %v1621_v24 = vld [vmem:[%s2116_s15 + $0x70] sm:$0xff]  }
 0x574   :  { %1554 = vmatpush3.bf16.msra.mxu0 %v1621_v24 }
 0x575   :  { %740 = vadd.xlane.f32.xlu1 %v735_v29  ;;  %v743_v32 = vmul.f32 %v735_v29, %v735_v29  ;;  %1555 = vmatprep.subr.bf16.mxu0 %v1659_v12 }
 0x577   :  { %744 = vadd.xlane.f32.xlu0 %v742_v31 }
 0x578   :  { %1556 = vmatpush3.bf16.msra.mxu0 %v1622_v25 }
 0x579   :  { %746 = vadd.xlane.f32.xlu1 %v743_v32 }
 0x600   :  { %v739_v20 = vpop.xlane.xlu0 %738 }
 0x601   :  { %v748_v43 = vmul.f32 0.03125, %v739_v20 }
 0x602   :  { %v741_v21 = vpop.xlane.xlu1 %740 }
 0x603   :  { %v749_v44 = vmul.f32 0.03125, %v741_v21  ;;  %v752_v46 = vmul.f32 %v748_v43, %v748_v43  ;;  %v756_v55 = vsub.f32 %v732_v26, %v748_v43  ;;  %v1367_v43 = vld [vmem:[%s2117_s13 + $0x1] ss:$0 sm:$0xff] }
 0x604   :  { %v745_v45 = vpop.xlane.xlu0 %744 }
 0x605   :  { %v750_v47 = vmul.f32 0.03125, %v745_v45  ;;  %v753_v49 = vmul.f32 %v749_v44, %v749_v44  ;;  %v757_v58 = vsub.f32 %v735_v29, %v749_v44 }
 0x606   :  { %v747_v48 = vpop.xlane.xlu1 %746 }
 0x607   :  { %v754_v50 = vsub.f32 %v750_v47, %v752_v46  ;;  %v751_v51 = vmul.f32 0.03125, %v747_v48  ;;  %v1368_v46 = vld [vmem:[%s2118_s14 + $0x1] ss:$0 sm:$0xff] }
 0x609   :  { %v758_v52 = vadd.f32 1e-05, %v754_v50  ;;  %v755_v53 = vsub.f32 %v751_v51, %v753_v49 }
 0x60b   :  { %1643 = vrsqrt.f32 %v758_v52  ;;  %v759_v54 = vadd.f32 1e-05, %v755_v53 }
 0x60d   :  { %1645 = vrsqrt.f32 %v759_v54 }
 0x615   :  { %v1644_v56 = vpop.eup %1643 }
 0x616   :  { %v762_v59 = vmul.f32 %v1644_v56, %v756_v55  ;;  %v1369_v55 = vld [vmem:[%s2119_s16 + $0x1] ss:$0 sm:$0xff] }
 0x617   :  { %v1646_v60 = vpop.eup %1645 }
 0x618   :  { %v763_v62 = vmul.f32 %v1646_v60, %v757_v58  ;;  %v770_v63 = vmul.f32 %v1318_v57, %v762_v59 }
 0x61a   :  { %v771_v0 = vmul.f32 %v1318_v57, %v763_v62  ;;  %v778_v1 = vadd.f32 %v1319_v61, %v770_v63 }
 0x61c   :  { %v779_v2 = vadd.f32 %v1319_v61, %v771_v0  ;;  %v780_v3 = vmax.f32 %v778_v1, 0.0 }
 0x61e   :  { %v781_v4 = vmax.f32 %v779_v2, 0.0  ;;  %v1997_v5 = vadd.f32 %v780_v3, %v1904_v38 }
 0x620   :  { %v2000_v6 = vadd.f32 %v781_v4, %v1906_v39 }
 0x622   :  { %v784_v7 = vpack.c.bf16 %v2000_v6, %v1997_v5 }
 0x624   :  { %1538 = vmatmul.mubr.bf16.vlgmr.msra.gmra.mrb[8].mxu1 %v784_v7 }
 0x625   :  { %1577 = vmatprep.mubr.msk.bf16.mxu1 %vm1660_vm2, %v1659_v12 }
 0x6f7   :  { %v892_v9 = vpop.f32.mrb[8].mxu1 }
 0x6f8   :  { %v893_v10 = vadd.f32 %v1337_v8, %v892_v9  ;;  %v1539_v11 = vpop.f32.mrb[9].mxu1 }
 0x6f9   :  { %v895_v13 = vpop.f32.mrb[10].mxu1 }
 0x6fa   :  { %v896_v38 = vadd.f32 %v1337_v8, %v895_v13  ;;  %926 = vadd.xlane.f32.xlu0 %v893_v10  ;;  %v1540_v14 = vpop.f32.mrb[11].mxu1  ;;  %v930_v39 = vmul.f32 %v893_v10, %v893_v10 }
 0x6fc   :  { %928 = vadd.xlane.f32.xlu1 %v896_v38  ;;  %v931_v15 = vmul.f32 %v896_v38, %v896_v38 }
 0x6fe   :  { %932 = vadd.xlane.f32.xlu0 %v930_v39 }
 0x700   :  { %934 = vadd.xlane.f32.xlu1 %v931_v15 }
 0x787   :  { %v927_v26 = vpop.xlane.xlu0 %926 }
 0x788   :  { %v936_v27 = vmul.f32 0.03125, %v927_v26 }
 0x789   :  { %v929_v28 = vpop.xlane.xlu1 %928 }
 0x78a   :  { %v937_v29 = vmul.f32 0.03125, %v929_v28  ;;  %v940_v31 = vmul.f32 %v936_v27, %v936_v27  ;;  %v944_v42 = vsub.f32 %v893_v10, %v936_v27 }
 0x78b   :  { %v933_v30 = vpop.xlane.xlu0 %932 }
 0x78c   :  { %v938_v32 = vmul.f32 0.03125, %v933_v30  ;;  %v941_v34 = vmul.f32 %v937_v29, %v937_v29  ;;  %v945_v21 = vsub.f32 %v896_v38, %v937_v29 }
 0x78d   :  { %v935_v33 = vpop.xlane.xlu1 %934 }
 0x78e   :  { %v942_v35 = vsub.f32 %v938_v32, %v940_v31  ;;  %v939_v36 = vmul.f32 0.03125, %v935_v33 }
 0x790   :  { %v946_v37 = vadd.f32 1e-05, %v942_v35  ;;  %v943_v40 = vsub.f32 %v939_v36, %v941_v34  ;;  %v1623_v35 = vld [vmem:[%s2122_s21] sm:$0xff]   ;;  %v1626_v36 = vld [vmem:[%s2122_s21 + $0x18] sm:$0xff]  }
 0x791   :  { %1562 = vmatpush3.bf16.msra.mxu1 %v1623_v35 }
 0x792   :  { %1647 = vrsqrt.f32 %v946_v37  ;;  %v947_v41 = vadd.f32 1e-05, %v943_v40  ;;  %1563 = vmatprep.subr.bf16.mxu1 %v1659_v12  ;;  %v1627_v37 = vld [vmem:[%s2122_s21 + $0x20] sm:$0xff]   ;;  %v1628_v40 = vld [vmem:[%s2122_s21 + $0x28] sm:$0xff]  }
 0x794   :  { %1649 = vrsqrt.f32 %v947_v41  ;;  %v1629_v41 = vld [vmem:[%s2122_s21 + $0x30] sm:$0xff]  }
 0x79c   :  { %v1648_v20 = vpop.eup %1647 }
 0x79d   :  { %v950_v44 = vmul.f32 %v1648_v20, %v944_v42  ;;  %v1630_v42 = vld [vmem:[%s2122_s21 + $0x38] sm:$0xff]  }
 0x79e   :  { %v1650_v45 = vpop.eup %1649 }
 0x79f   :  { %v951_v47 = vmul.f32 %v1650_v45, %v945_v21  ;;  %v958_v48 = vmul.f32 %v1367_v43, %v950_v44 }
 0x7a1   :  { %v959_v49 = vmul.f32 %v1367_v43, %v951_v47  ;;  %v966_v50 = vadd.f32 %v1368_v46, %v958_v48 }
 0x7a3   :  { %v967_v51 = vadd.f32 %v1368_v46, %v959_v49  ;;  %v968_v52 = vmax.f32 %v966_v50, 0.0 }
 0x7a5   :  { %v969_v53 = vmax.f32 %v967_v51, 0.0 }
 0x7a7   :  { %v970_v54 = vpack.c.bf16 %v969_v53, %v968_v52 }
 0x7a9   :  { %1558 = vmatmul.mubr.bf16.vlgmr.msra.gmra.mrb[12].mxu0 %v970_v54 }
 0x87c   :  { %v1059_v56 = vpop.f32.mrb[12].mxu0 }
 0x87d   :  { %v1060_v57 = vadd.f32 %v1369_v55, %v1059_v56  ;;  %v1559_v58 = vpop.f32.mrb[13].mxu0 }
 0x87e   :  { %v1062_v59 = vpop.f32.mrb[14].mxu0 }
 0x87f   :  { %v1063_v60 = vadd.f32 %v1369_v55, %v1062_v59  ;;  %1066 = vadd.xlane.f32.xlu0 %v1060_v57  ;;  %v1560_v61 = vpop.f32.mrb[15].mxu0  ;;  %v1070_v62 = vmul.f32 %v1060_v57, %v1060_v57 }
 0x881   :  { %1068 = vadd.xlane.f32.xlu1 %v1063_v60  ;;  %v1071_v63 = vmul.f32 %v1063_v60, %v1063_v60 }
 0x883   :  { %1072 = vadd.xlane.f32.xlu0 %v1070_v62 }
 0x885   :  { %1074 = vadd.xlane.f32.xlu1 %v1071_v63 }
 0x90c   :  { %v1067_v0 = vpop.xlane.xlu0 %1066 }
 0x90d   :  { %v1076_v1 = vmul.f32 0.03125, %v1067_v0 }
 0x90e   :  { %v1069_v2 = vpop.xlane.xlu1 %1068 }
 0x90f   :  { %v1077_v3 = vmul.f32 0.03125, %v1069_v2  ;;  %v1080_v7 = vmul.f32 %v1076_v1, %v1076_v1  ;;  %v1084_v15 = vsub.f32 %v1060_v57, %v1076_v1 }
 0x910   :  { %v1073_v4 = vpop.xlane.xlu0 %1072 }
 0x911   :  { %v1078_v8 = vmul.f32 0.03125, %v1073_v4  ;;  %v1081_v10 = vmul.f32 %v1077_v3, %v1077_v3  ;;  %v1085_v18 = vsub.f32 %v1063_v60, %v1077_v3  ;;  %v1381_v60 = vld [vmem:[%s2124_s20] ss:$0 sm:$0xff] }
 0x912   :  { %v1075_v9 = vpop.xlane.xlu1 %1074 }
 0x913   :  { %v1082_v11 = vsub.f32 %v1078_v8, %v1080_v7  ;;  %v1079_v13 = vmul.f32 0.03125, %v1075_v9  ;;  %v1382_v7 = vld [vmem:[%s2125_s22] ss:$0 sm:$0xff] }
 0x915   :  { %v1086_v38 = vadd.f32 1e-05, %v1082_v11  ;;  %v1083_v14 = vsub.f32 %v1079_v13, %v1081_v10 }
 0x917   :  { %1651 = vrsqrt.f32 %v1086_v38  ;;  %v1087_v39 = vadd.f32 1e-05, %v1083_v14 }
 0x919   :  { %1653 = vrsqrt.f32 %v1087_v39 }
 0x921   :  { %v1652_v16 = vpop.eup %1651 }
 0x922   :  { %v1090_v19 = vmul.f32 %v1652_v16, %v1084_v15 }
 0x923   :  { %v1654_v22 = vpop.eup %1653 }
 0x924   :  { %v1098_v24 = vmul.f32 %v1378_v17, %v1090_v19  ;;  %v1091_v25 = vmul.f32 %v1654_v22, %v1085_v18 }
 0x926   :  { %v1106_v26 = vadd.f32 %v1379_v23, %v1098_v24  ;;  %v1099_v27 = vmul.f32 %v1378_v17, %v1091_v25 }
 0x928   :  { %v1108_v28 = vmax.f32 %v1106_v26, 0.0  ;;  %v1107_v29 = vadd.f32 %v1379_v23, %v1099_v27 }
 0x92a   :  { %v1110_v30 = vadd.f32 %v1108_v28, %v1997_v5  ;;  %v1109_v31 = vmax.f32 %v1107_v29, 0.0  ;;  %v1624_v5 = vld [vmem:[%s2122_s21 + $0x8] sm:$0xff]  }
 0x92b   :  { %1564 = vmatpush3.bf16.msra.mxu1 %v1624_v5 }
 0x92c   :  { %1114 = vadd.xlane.f32.xlu0 %v1110_v30  ;;  %v1111_v32 = vadd.f32 %v1109_v31, %v2000_v6  ;;  %v1118_v33 = vmul.f32 %v1110_v30, %v1110_v30  ;;  %1565 = vmatprep.subr.bf16.mxu1 %v1659_v12  ;;  %v1625_v6 = vld [vmem:[%s2122_s21 + $0x10] sm:$0xff]  }
 0x92e   :  { %1116 = vadd.xlane.f32.xlu1 %v1111_v32  ;;  %v1119_v34 = vmul.f32 %v1111_v32, %v1111_v32 }
 0x92f   :  { %1566 = vmatpush3.bf16.msra.mxu1 %v1625_v6 }
 0x930   :  { %1120 = vadd.xlane.f32.xlu0 %v1118_v33  ;;  %1567 = vmatprep.subr.bf16.mxu1 %v1659_v12 }
 0x932   :  { %1122 = vadd.xlane.f32.xlu1 %v1119_v34 }
 0x933   :  { %1568 = vmatpush3.bf16.msra.mxu1 %v1626_v36 }
 0x934   :  { %1569 = vmatprep.subr.bf16.mxu1 %v1659_v12 }
 0x937   :  { %1570 = vmatpush3.bf16.msra.mxu1 %v1627_v37 }
 0x938   :  { %1571 = vmatprep.subr.bf16.mxu1 %v1659_v12 }
 0x93b   :  { %1572 = vmatpush3.bf16.msra.mxu1 %v1628_v40 }
 0x93c   :  { %1573 = vmatprep.subr.bf16.mxu1 %v1659_v12 }
 0x93f   :  { %1574 = vmatpush3.bf16.msra.mxu1 %v1629_v41 }
 0x940   :  { %1575 = vmatprep.subr.bf16.mxu1 %v1659_v12  ;;  %v1380_v12 = vld [vmem:[%s2123_s19] ss:$0 sm:$0xff] }
 0x943   :  { %1576 = vmatpush3.bf16.msra.mxu1 %v1630_v42 }
 0x9b9   :  { %v1115_v20 = vpop.xlane.xlu0 %1114 }
 0x9ba   :  { %v1124_v43 = vmul.f32 0.03125, %v1115_v20 }
 0x9bb   :  { %v1117_v21 = vpop.xlane.xlu1 %1116 }
 0x9bc   :  { %v1125_v44 = vmul.f32 0.03125, %v1117_v21  ;;  %v1128_v46 = vmul.f32 %v1124_v43, %v1124_v43  ;;  %v1132_v55 = vsub.f32 %v1110_v30, %v1124_v43 }
 0x9bd   :  { %v1121_v45 = vpop.xlane.xlu0 %1120 }
 0x9be   :  { %v1126_v47 = vmul.f32 0.03125, %v1121_v45  ;;  %v1129_v49 = vmul.f32 %v1125_v44, %v1125_v44  ;;  %v1133_v57 = vsub.f32 %v1111_v32, %v1125_v44 }
 0x9bf   :  { %v1123_v48 = vpop.xlane.xlu1 %1122 }
 0x9c0   :  { %v1130_v50 = vsub.f32 %v1126_v47, %v1128_v46  ;;  %v1127_v51 = vmul.f32 0.03125, %v1123_v48 }
 0x9c2   :  { %v1134_v52 = vadd.f32 1e-05, %v1130_v50  ;;  %v1131_v53 = vsub.f32 %v1127_v51, %v1129_v49 }
 0x9c4   :  { %1655 = vrsqrt.f32 %v1134_v52  ;;  %v1135_v54 = vadd.f32 1e-05, %v1131_v53 }
 0x9c6   :  { %1657 = vrsqrt.f32 %v1135_v54 }
 0x9ce   :  { %v1656_v56 = vpop.eup %1655 }
 0x9cf   :  { %v1138_v58 = vmul.f32 %v1656_v56, %v1132_v55 }
 0x9d0   :  { %v1658_v59 = vpop.eup %1657 }
 0x9d1   :  { %v1139_v61 = vmul.f32 %v1658_v59, %v1133_v57  ;;  %v1146_v62 = vmul.f32 %v1380_v12, %v1138_v58 }
 0x9d3   :  { %v1147_v63 = vmul.f32 %v1380_v12, %v1139_v61  ;;  %v1154_v0 = vadd.f32 %v1381_v60, %v1146_v62 }
 0x9d5   :  { %v1155_v1 = vadd.f32 %v1381_v60, %v1147_v63  ;;  %v1156_v2 = vmax.f32 %v1154_v0, 0.0 }
 0x9d7   :  { %v1157_v3 = vmax.f32 %v1155_v1, 0.0 }
 0x9d9   :  { %v1158_v4 = vpack.c.bf16 %v1157_v3, %v1156_v2 }
 0x9db   :  { %1578 = vmatmul.mubr.bf16.vlgmr.msra.gmra.mrb[12].mxu1 %v1158_v4 }
 0xaae   :  { %v1264_v8 = vpop.f32.mrb[12].mxu1 }
 0xaaf   :  { %v1265_v9 = vadd.f32 %v1382_v7, %v1264_v8  ;;  %v1579_v10 = vpop.f32.mrb[13].mxu1 }
 0xab0   :  { %v1267_v11 = vpop.f32.mrb[14].mxu1 }
 0xab1   :  { %1271 = vst [vmem:[%s2126_s23] sm:$0xff] %v1265_v9  ;;  %v1268_v13 = vadd.f32 %v1382_v7, %v1267_v11  ;;  %v1580_v38 = vpop.f32.mrb[15].mxu1 }
 0xab3   :  { %1272 = vst [vmem:[%s2126_s23 + $0x8] sm:$0xff] %v1268_v13 }

</bundles_post_ra>
